<compile_context>
chip_gen: v6e
topology: v6e:2x2x1
jax: 0.10.0
libtpu: 0.0.40
codegen_flags: <defaults>
</compile_context>

<pallas_src>
import jax
import jax.numpy as jnp
from jax.experimental import pallas as pl
from jax.experimental.pallas import tpu as pltpu


# ----------------------------------------------------------------------------
# Pallas kernel: the entire forward compute on full-array VMEM blocks.
# ----------------------------------------------------------------------------
def polygnn_kernel(a_ref, x_ref, w2_ref, m_ref, wfc1_ref, wfc2_ref,
                   pblk_ref, out_ref):
    f32, bf16 = jnp.float32, jnp.bfloat16
    hp = w2_ref.shape[1]            # padded hidden (128)
    outp = out_ref.shape[1]         # padded output classes (128)
    bp = out_ref.shape[0]           # padded batch (8)

    a = a_ref[...]                  # [Np, Np] bf16 normalized adjacency
    pblk = pblk_ref[...]            # [8, 128] packed params (f32)
    b1 = pblk[0:1, :hp]
    b2 = pblk[1:2, :hp]
    bfc = pblk[2:3, :outp]
    w1r0 = pblk[3:4, :hp]           # row 0 of W1 (input feature 0)
    w1r1 = pblk[4:5, :hp]           # row 1 of W1 (input feature 1)

    x = x_ref[...]                  # [Np, 2] f32 node features

    # GCN layer 1:  relu( A_hat @ (X @ W1) + b1 )
    # K=2 contraction done as a VPU outer product (co-issues under MXU work).
    xw = x[:, 0:1] * w1r0 + x[:, 1:2] * w1r1                        # [Np, Hp] f32
    h = jnp.dot(a, xw.astype(bf16), preferred_element_type=f32) + b1
    h = jnp.maximum(h, 0.0).astype(bf16)                            # one cast feeds next dot

    # Dropout(0.5) -> identity at inference time.

    # GCN layer 2:  relu( A_hat @ (H @ W2) + b2 )   -- all bf16 operands.
    hw = jnp.dot(h, w2_ref[...], preferred_element_type=f32)        # [Np, Hp] f32
    h2 = jnp.dot(a, hw.astype(bf16), preferred_element_type=f32) + b2
    h2 = jnp.maximum(h2, 0.0).astype(bf16)

    # Fused masked mean-pools: single [2*Bp, Np] @ [Np, Hp] bf16 matmul.
    p = jnp.dot(m_ref[...], h2, preferred_element_type=f32).astype(bf16)   # [2*Bp, Hp]

    # fc(cat([pool1, pool2], dim=1)): two sublane-aligned bf16 matmuls,
    # lane-dense (unmasked) [8,128] output store.
    out = (jnp.dot(p[:bp], wfc1_ref[...], preferred_element_type=f32)
           + jnp.dot(p[bp:], wfc2_ref[...], preferred_element_type=f32)
           + bfc)                                                    # [Bp, OUTp] f32
    out_ref[...] = out.astype(out_ref.dtype)


# ----------------------------------------------------------------------------
# One-time graph / parameter preprocessing (hoisted out of the hot path).
# ----------------------------------------------------------------------------
def gcn_normalized_adjacency(edge_index, num_nodes):
    """A_hat = D^{-1/2} (A + I) D^{-1/2}, PyG add_remaining_self_loops style.

    Duplicate edges sum (like GCNConv's scatter-add); self loops are only
    added to nodes that do not already have one.
    """
    src, dst = edge_index[0], edge_index[1]
    a = jnp.zeros((num_nodes, num_nodes), jnp.float32).at[src, dst].add(1.0)
    diag = jnp.diagonal(a)
    a = a + jnp.diag(jnp.where(diag == 0.0, 1.0, 0.0))
    deg = jnp.sum(a, axis=1)
    d_inv_sqrt = jnp.where(deg > 0, 1.0 / jnp.sqrt(deg), 0.0)
    return a * d_inv_sqrt[:, None] * d_inv_sqrt[None, :]


def mean_pool_matrix(select_mask, batch, num_graphs):
    """M[b, n] = select_mask[n] * (batch[n] == b) / count_b  (mean pool)."""
    onehot = (batch[None, :] == jnp.arange(num_graphs)[:, None]).astype(jnp.float32)
    m = onehot * select_mask[None, :].astype(jnp.float32)
    counts = jnp.maximum(jnp.sum(m, axis=1, keepdims=True), 1.0)
    return m / counts


def _round_up(v, m):
    return ((v + m - 1) // m) * m


def prepare_polygnn(x, edge_index, graph_id, batch, params, num_graphs,
                    num_classes=7):
    n, in_dim = x.shape
    assert in_dim == 2, "PolyGNN expects 2-D node features"
    assert bool(jnp.all((graph_id == 0) | (graph_id == 1))), \
        "graph_id must be in {0, 1}"

    hidden = params["w1"].shape[1]
    hp = max(128, _round_up(hidden, 128))         # padded hidden dim
    outp = max(128, _round_up(num_classes, 128))  # lane-dense fc output
    bp = max(8, _round_up(num_graphs, 8))         # sublane-padded batch
    np_ = max(128, _round_up(n, 128))             # lane/sublane-dense node dim

    a_hat = gcn_normalized_adjacency(edge_index, n)
    a_pad = (jnp.zeros((np_, np_), jnp.float32)
             .at[:n, :n].set(a_hat).astype(jnp.bfloat16))

    x_pad = jnp.zeros((np_, in_dim), jnp.float32).at[:n].set(x.astype(jnp.float32))

    m1 = mean_pool_matrix(graph_id == 0, batch, num_graphs)   # [B, N]
    m2 = mean_pool_matrix(graph_id == 1, batch, num_graphs)   # [B, N]
    m_stacked = jnp.zeros((2 * bp, np_), jnp.float32)
    m_stacked = m_stacked.at[:num_graphs, :n].set(m1)
    m_stacked = m_stacked.at[bp:bp + num_graphs, :n].set(m2)
    m_stacked = m_stacked.astype(jnp.bfloat16)

    w2_pad = (jnp.zeros((hp, hp), jnp.float32)
              .at[:hidden, :hidden].set(params["w2"]).astype(jnp.bfloat16))
    wfc = params["wfc"]                                        # [2H, 7]
    wfc1_pad = (jnp.zeros((hp, outp), jnp.float32)
                .at[:hidden, :num_classes].set(wfc[:hidden]).astype(jnp.bfloat16))
    wfc2_pad = (jnp.zeros((hp, outp), jnp.float32)
                .at[:hidden, :num_classes].set(wfc[hidden:]).astype(jnp.bfloat16))

    # Packed (8, 128) parameter block: biases + the two rows of W1 (kept f32
    # so the outer product and bias adds stay full precision).
    bw = max(hp, outp)
    pblk = jnp.zeros((8, bw), jnp.float32)
    pblk = pblk.at[0, :hidden].set(params["b1"])
    pblk = pblk.at[1, :hidden].set(params["b2"])
    pblk = pblk.at[2, :num_classes].set(params["bfc"])
    pblk = pblk.at[3, :hidden].set(params["w1"][0])
    pblk = pblk.at[4, :hidden].set(params["w1"][1])

    return {
        "a": a_pad,
        "x": x_pad,
        "w2": w2_pad,
        "m": m_stacked,
        "wfc1": wfc1_pad, "wfc2": wfc2_pad,
        "pblk": pblk,
    }


# ----------------------------------------------------------------------------
# Forward: one pallas_call on the prepared operands.
# ----------------------------------------------------------------------------
def _vmem_limit_bytes(default=48 * 1024 * 1024):
    """Per-generation VMEM limit with headroom (v7x has only 64 MiB / TC)."""
    try:
        cap = getattr(pltpu.get_tpu_info(), "vmem_capacity_bytes", None)
        if cap is None:
            return default
        return min(int(cap) * 3 // 4, 100 * 1024 * 1024)
    except Exception:
        return default


def polygnn_forward(prepped, num_graphs, num_classes=7):
    bp = prepped["m"].shape[0] // 2
    outp = prepped["wfc1"].shape[1]
    np_ = prepped["a"].shape[0]
    hp = prepped["w2"].shape[1]

    args = (prepped["a"], prepped["x"], prepped["w2"], prepped["m"],
            prepped["wfc1"], prepped["wfc2"], prepped["pblk"])

    flops = 2 * (np_ * 2 * hp              # X@W1 outer product (VPU)
                 + 2 * np_ * np_ * hp      # two A_hat @ H matmuls
                 + np_ * hp * hp           # H @ W2
                 + 2 * bp * np_ * hp       # fused pooling matmul
                 + 2 * bp * hp * outp)     # fc
    bytes_accessed = (sum(int(v.size) * v.dtype.itemsize for v in args)
                      + bp * outp * 4)

    vmem = pl.BlockSpec(memory_space=pltpu.MemorySpace.VMEM)
    out_pad = pl.pallas_call(
        polygnn_kernel,
        out_shape=jax.ShapeDtypeStruct((bp, outp), jnp.float32),
        in_specs=[vmem] * len(args),
        out_specs=vmem,
        compiler_params=pltpu.CompilerParams(
            vmem_limit_bytes=_vmem_limit_bytes()),
        cost_estimate=pl.CostEstimate(flops=flops, transcendentals=0,
                                      bytes_accessed=bytes_accessed),
    )(*args)
    return out_pad[:num_graphs, :num_classes]


# Pure-JAX reference mirroring the kernel's numerics (same bf16 casts).
def polygnn_reference(prepped, num_graphs, num_classes=7):
    f32, bf16 = jnp.float32, jnp.bfloat16
    pblk = prepped["pblk"]
    hp = prepped["w2"].shape[1]
    outp = prepped["wfc1"].shape[1]
    bp = prepped["m"].shape[0] // 2
    a = prepped["a"]
    x = prepped["x"]
    b1, b2, bfc = pblk[0:1, :hp], pblk[1:2, :hp], pblk[2:3, :outp]
    w1r0, w1r1 = pblk[3:4, :hp], pblk[4:5, :hp]

    xw = x[:, 0:1] * w1r0 + x[:, 1:2] * w1r1
    h = jnp.dot(a, xw.astype(bf16), preferred_element_type=f32) + b1
    h = jnp.maximum(h, 0.0).astype(bf16)
    hw = jnp.dot(h, prepped["w2"], preferred_element_type=f32)
    h2 = jnp.dot(a, hw.astype(bf16), preferred_element_type=f32) + b2
    h2 = jnp.maximum(h2, 0.0).astype(bf16)
    p = jnp.dot(prepped["m"], h2, preferred_element_type=f32).astype(bf16)
    out = (jnp.dot(p[:bp], prepped["wfc1"], preferred_element_type=f32)
           + jnp.dot(p[bp:], prepped["wfc2"], preferred_element_type=f32)
           + bfc)
    return out[:num_graphs, :num_classes]


if __name__ == "__main__":
    hidden_dim = 64      # module default
    num_graphs = 8       # batch of 8 polygon pairs (amortizes launch overhead)
    n_per_group = 16     # nodes per (batch, poly) group
    N = num_graphs * 2 * n_per_group   # 256 nodes total

    key = jax.random.PRNGKey(0)
    k_x, k_w1, k_b1, k_w2, k_b2, k_wfc, k_bfc = jax.random.split(key, 7)

    # Node features [N, 2]
    x = jax.random.normal(k_x, (N, 2), jnp.float32)

    # Node metadata: batch id and poly (graph_id) per node.
    batch = jnp.repeat(jnp.arange(num_graphs), 2 * n_per_group)            # [N]
    graph_id = jnp.tile(jnp.repeat(jnp.arange(2), n_per_group), num_graphs)

    # Edges: a ring within each (batch, poly) group, stored both directions.
    src_list, dst_list = [], []
    for g in range(num_graphs * 2):
        base = g * n_per_group
        for i in range(n_per_group):
            a_node = base + i
            b_node = base + (i + 1) % n_per_group
            src_list += [a_node, b_node]
            dst_list += [b_node, a_node]
    edge_index = jnp.array([src_list, dst_list], jnp.int32)                # [2, E]

    # Deterministic parameters (GCNConv1, GCNConv2, fc).
    params = {
        "w1": jax.random.normal(k_w1, (2, hidden_dim), jnp.float32) * 0.5,
        "b1": jax.random.normal(k_b1, (hidden_dim,), jnp.float32) * 0.1,
        "w2": jax.random.normal(k_w2, (hidden_dim, hidden_dim), jnp.float32) * 0.1,
        "b2": jax.random.normal(k_b2, (hidden_dim,), jnp.float32) * 0.1,
        "wfc": jax.random.normal(k_wfc, (2 * hidden_dim, 7), jnp.float32) * 0.1,
        "bfc": jax.random.normal(k_bfc, (7,), jnp.float32) * 0.1,
    }

    # One-time preprocessing (hoisted out of the per-inference path).
    prepped = prepare_polygnn(x, edge_index, graph_id, batch, params, num_graphs)
    prepped = jax.tree_util.tree_map(jax.block_until_ready, prepped)

    out = polygnn_forward(prepped, num_graphs)
    out = jax.block_until_ready(out)

    ref = polygnn_reference(prepped, num_graphs)
    assert out.shape == (num_graphs, 7)
    assert jnp.allclose(out, ref, atol=2e-2, rtol=2e-2), "mismatch vs reference"

    print("KERNEL_OK")
</pallas_src>

<mosaic_0001>
module attributes {stable_mosaic.version = 11 : i64} {
  func.func @polygnn_kernel(%arg0: memref<256x256xbf16, #tpu.memory_space<vmem>>, %arg1: memref<256x2xf32, #tpu.memory_space<vmem>>, %arg2: memref<128x128xbf16, #tpu.memory_space<vmem>>, %arg3: memref<16x256xbf16, #tpu.memory_space<vmem>>, %arg4: memref<128x128xbf16, #tpu.memory_space<vmem>>, %arg5: memref<128x128xbf16, #tpu.memory_space<vmem>>, %arg6: memref<8x128xf32, #tpu.memory_space<vmem>>, %arg7: memref<8x128xf32, #tpu.memory_space<vmem>>) attributes {dimension_semantics = [], scalar_prefetch = 0 : i64, scratch_operands = 0 : i64, tpu.core_type = #tpu.core_type<tc>} {
    %c0 = arith.constant 0 : index
    %c0_0 = arith.constant 0 : index
    %0 = vector.load %arg0[%c0, %c0_0] : memref<256x256xbf16, #tpu.memory_space<vmem>>, vector<256x256xbf16>
    %c0_1 = arith.constant 0 : index
    %c0_2 = arith.constant 0 : index
    %1 = vector.load %arg6[%c0_1, %c0_2] : memref<8x128xf32, #tpu.memory_space<vmem>>, vector<8x128xf32>
    %2 = vector.extract_strided_slice %1 {offsets = [0, 0], sizes = [1, 128], strides = [1, 1]} : vector<8x128xf32> to vector<1x128xf32>
    %3 = vector.extract_strided_slice %1 {offsets = [1, 0], sizes = [1, 128], strides = [1, 1]} : vector<8x128xf32> to vector<1x128xf32>
    %4 = vector.extract_strided_slice %1 {offsets = [2, 0], sizes = [1, 128], strides = [1, 1]} : vector<8x128xf32> to vector<1x128xf32>
    %5 = vector.extract_strided_slice %1 {offsets = [3, 0], sizes = [1, 128], strides = [1, 1]} : vector<8x128xf32> to vector<1x128xf32>
    %6 = vector.extract_strided_slice %1 {offsets = [4, 0], sizes = [1, 128], strides = [1, 1]} : vector<8x128xf32> to vector<1x128xf32>
    %c0_3 = arith.constant 0 : index
    %c0_4 = arith.constant 0 : index
    %7 = vector.load %arg1[%c0_3, %c0_4] : memref<256x2xf32, #tpu.memory_space<vmem>>, vector<256x2xf32>
    %8 = vector.extract_strided_slice %7 {offsets = [0, 0], sizes = [256, 1], strides = [1, 1]} : vector<256x2xf32> to vector<256x1xf32>
    %9 = vector.broadcast %8 : vector<256x1xf32> to vector<256x128xf32>
    %10 = vector.broadcast %5 : vector<1x128xf32> to vector<256x128xf32>
    %11 = arith.mulf %9, %10 : vector<256x128xf32>
    %12 = vector.extract_strided_slice %7 {offsets = [0, 1], sizes = [256, 1], strides = [1, 1]} : vector<256x2xf32> to vector<256x1xf32>
    %13 = vector.broadcast %12 : vector<256x1xf32> to vector<256x128xf32>
    %14 = vector.broadcast %6 : vector<1x128xf32> to vector<256x128xf32>
    %15 = arith.mulf %13, %14 : vector<256x128xf32>
    %16 = arith.addf %11, %15 : vector<256x128xf32>
    %17 = arith.truncf %16 : vector<256x128xf32> to vector<256x128xbf16>
    %cst = arith.constant dense<0.000000e+00> : vector<256x128xf32>
    %18 = tpu.matmul %0, %17, %cst {dimension_numbers = #tpu.dot_dimension_numbers<[1], [0], [0], [1], [0, 0, 1, 1], [], []>} : vector<256x256xbf16>, vector<256x128xbf16>, vector<256x128xf32> -> vector<256x128xf32>
    %19 = vector.broadcast %2 : vector<1x128xf32> to vector<256x128xf32>
    %20 = arith.addf %18, %19 : vector<256x128xf32>
    %cst_5 = arith.constant 0.000000e+00 : f32
    %21 = vector.broadcast %cst_5 : f32 to vector<256x128xf32>
    %22 = arith.maximumf %20, %21 : vector<256x128xf32>
    %23 = arith.truncf %22 : vector<256x128xf32> to vector<256x128xbf16>
    %c0_6 = arith.constant 0 : index
    %c0_7 = arith.constant 0 : index
    %24 = vector.load %arg2[%c0_6, %c0_7] : memref<128x128xbf16, #tpu.memory_space<vmem>>, vector<128x128xbf16>
    %cst_8 = arith.constant dense<0.000000e+00> : vector<256x128xf32>
    %25 = tpu.matmul %23, %24, %cst_8 {dimension_numbers = #tpu.dot_dimension_numbers<[1], [0], [0], [1], [0, 0, 1, 1], [], []>} : vector<256x128xbf16>, vector<128x128xbf16>, vector<256x128xf32> -> vector<256x128xf32>
    %26 = arith.truncf %25 : vector<256x128xf32> to vector<256x128xbf16>
    %cst_9 = arith.constant dense<0.000000e+00> : vector<256x128xf32>
    %27 = tpu.matmul %0, %26, %cst_9 {dimension_numbers = #tpu.dot_dimension_numbers<[1], [0], [0], [1], [0, 0, 1, 1], [], []>} : vector<256x256xbf16>, vector<256x128xbf16>, vector<256x128xf32> -> vector<256x128xf32>
    %28 = vector.broadcast %3 : vector<1x128xf32> to vector<256x128xf32>
    %29 = arith.addf %27, %28 : vector<256x128xf32>
    %cst_10 = arith.constant 0.000000e+00 : f32
    %30 = vector.broadcast %cst_10 : f32 to vector<256x128xf32>
    %31 = arith.maximumf %29, %30 : vector<256x128xf32>
    %32 = arith.truncf %31 : vector<256x128xf32> to vector<256x128xbf16>
    %c0_11 = arith.constant 0 : index
    %c0_12 = arith.constant 0 : index
    %33 = vector.load %arg3[%c0_11, %c0_12] : memref<16x256xbf16, #tpu.memory_space<vmem>>, vector<16x256xbf16>
    %cst_13 = arith.constant dense<0.000000e+00> : vector<16x128xf32>
    %34 = tpu.matmul %33, %32, %cst_13 {dimension_numbers = #tpu.dot_dimension_numbers<[1], [0], [0], [1], [0, 0, 1, 1], [], []>} : vector<16x256xbf16>, vector<256x128xbf16>, vector<16x128xf32> -> vector<16x128xf32>
    %35 = arith.truncf %34 : vector<16x128xf32> to vector<16x128xbf16>
    %36 = vector.extract_strided_slice %35 {offsets = [0, 0], sizes = [8, 128], strides = [1, 1]} : vector<16x128xbf16> to vector<8x128xbf16>
    %c0_14 = arith.constant 0 : index
    %c0_15 = arith.constant 0 : index
    %37 = vector.load %arg4[%c0_14, %c0_15] : memref<128x128xbf16, #tpu.memory_space<vmem>>, vector<128x128xbf16>
    %cst_16 = arith.constant dense<0.000000e+00> : vector<8x128xf32>
    %38 = tpu.matmul %36, %37, %cst_16 {dimension_numbers = #tpu.dot_dimension_numbers<[1], [0], [0], [1], [0, 0, 1, 1], [], []>} : vector<8x128xbf16>, vector<128x128xbf16>, vector<8x128xf32> -> vector<8x128xf32>
    %39 = vector.extract_strided_slice %35 {offsets = [8, 0], sizes = [8, 128], strides = [1, 1]} : vector<16x128xbf16> to vector<8x128xbf16>
    %c0_17 = arith.constant 0 : index
    %c0_18 = arith.constant 0 : index
    %40 = vector.load %arg5[%c0_17, %c0_18] : memref<128x128xbf16, #tpu.memory_space<vmem>>, vector<128x128xbf16>
    %cst_19 = arith.constant dense<0.000000e+00> : vector<8x128xf32>
    %41 = tpu.matmul %39, %40, %cst_19 {dimension_numbers = #tpu.dot_dimension_numbers<[1], [0], [0], [1], [0, 0, 1, 1], [], []>} : vector<8x128xbf16>, vector<128x128xbf16>, vector<8x128xf32> -> vector<8x128xf32>
    %42 = arith.addf %38, %41 : vector<8x128xf32>
    %43 = vector.broadcast %4 : vector<1x128xf32> to vector<8x128xf32>
    %44 = arith.addf %42, %43 : vector<8x128xf32>
    %c0_20 = arith.constant 0 : index
    %c0_21 = arith.constant 0 : index
    %45 = vector.load %arg7[%c0_20, %c0_21] : memref<8x128xf32, #tpu.memory_space<vmem>>, vector<8x128xf32>
    tpu.vector_store %arg7[%c0_20, %c0_21], %44 {strides = array<i32>} : memref<8x128xf32, #tpu.memory_space<vmem>>, vector<8x128xf32>,
    return
  }
}

</mosaic_0001>

<bundles_post_ra>
// kernel: tpu_custom_call.1
= control target key start
LH: loop header
LB: loop body
LE: loop exit
PB: predicated region body
PF: predicated region fallthrough
CT: control target
= control target key end

     0   :  { %12 = vsyncpa [#allocation3], 0  ;;  %s2986_s0 = inlined_call_operand.vmem [shape: bf16[256,256], index: 0, kind: input, shape index: {}]   ;;  %s2987_s1 = inlined_call_operand.vmem [shape: f32[256,2], index: 1, kind: input, shape index: {}]   ;;  %s2988_s2 = inlined_call_operand.hbm [shape: bf16[128,128], index: 2, kind: input, shape index: {}]   ;;  %s2989_s3 = inlined_call_operand.hbm [shape: bf16[16,256], index: 3, kind: input, shape index: {}]   ;;  %s2990_s4 = inlined_call_operand.hbm [shape: bf16[128,128], index: 4, kind: input, shape index: {}]   ;;  %s2991_s5 = inlined_call_operand.hbm [shape: bf16[128,128], index: 5, kind: input, shape index: {}]   ;;  %s2992_s6 = inlined_call_operand.vmem [shape: f32[8,128], index: 6, kind: input, shape index: {}]   ;;  %s2993_s7 = inlined_call_operand.hbm [shape: f32[8,128], index: 7, kind: output, shape index: {}]  }
   0x1   :  { %13 = vsyncpa [#allocation6], 0 }
   0x2   :  { %14 = vsyncpa [#allocation9], 0 }
   0x3   :  { %15 = vsyncpa [#allocation4], 0  ;;  %s2335_s24 = smov [#allocation5]  }
   0x4   :  { %s37_s25 = sshll.u32 %s2335_s24, 4  ;;  %s38_s25 = int_to_ptr.vmem [resolvable:$true] %s37_s25 }
   0x5   :  { %s2235_s26 = scalar_lea.vmem %s38_s25, 256  ;;  %p2240_p1 = scmp.lt.s32.totalorder %s38_s25, %s38_s25 }
   0x6   :  { %p2236_p0 = scmp.ne.s32.totalorder %s38_s25, %s2235_s26  ;;  %p2241_p2 = scmp.lt.s32.totalorder %s2235_s26, %s2235_s26 }
   0x8   :  { %p2242_p3 = por %p2241_p2, %p2240_p1 }
   0xa   :  { %p2243_p4 = pnand %p2242_p3, %p2236_p0 }
   0xc   :  { %2246 = shalt.err (!%p2243_p4)
}
   0xd   :  { %s2336_s27 = smov 128   ;;  %s2337_s28 = smov 8  }
   0xe   :  { %43 = dma.hbm_to_vmem [thread:$0]  %s2989_s3, 256, %s38_s25, [#allocation6], %s2336_s27, %s2336_s27, %s2337_s28  }
   0xf   :  { %s2338_s8 = smov [#allocation2]  }
  0x10   :  { %s25_s9 = sshll.u32 %s2338_s8, 4  ;;  %s26_s9 = int_to_ptr.vmem [resolvable:$true] %s25_s9 }
  0x11   :  { %s2255_s10 = scalar_lea.vmem %s26_s9, 1024  ;;  %p2260_p6 = scmp.lt.s32.totalorder %s26_s9, %s26_s9 }
  0x12   :  { %p2256_p5 = scmp.ne.s32.totalorder %s26_s9, %s2255_s10  ;;  %p2261_p7 = scmp.lt.s32.totalorder %s2255_s10, %s2255_s10 }
  0x14   :  { %p2262_p8 = por %p2261_p7, %p2260_p6 }
  0x16   :  { %p2263_p9 = pnand %p2262_p8, %p2256_p5 }
  0x18   :  { %2266 = shalt.err (!%p2263_p9)
}
  0x19   :  { %s2339_s11 = smov 64   ;;  %s2340_s12 = smov 4  }
  0x1a   :  { %31 = dma.hbm_to_vmem [thread:$0]  %s2988_s2, 1024, %s26_s9, [#allocation3], %s2339_s11, %s2339_s11, %s2340_s12  }
  0x1b   :  { %s2341_s15 = smov [#allocation7]   ;;  %s2342_s17 = smov [#allocation8]  }
  0x1c   :  { %s49_s16 = sshll.u32 %s2341_s15, 4  ;;  %s61_s3 = sshll.u32 %s2342_s17, 4  ;;  %s50_s16 = int_to_ptr.vmem [resolvable:$true] %s49_s16  ;;  %s62_s3 = int_to_ptr.vmem [resolvable:$true] %s61_s3 }
  0x1d   :  { %s2275_s18 = scalar_lea.vmem %s50_s16, 1024  ;;  %p2280_p11 = scmp.lt.s32.totalorder %s50_s16, %s50_s16 }
  0x1e   :  { %p2276_p10 = scmp.ne.s32.totalorder %s50_s16, %s2275_s18  ;;  %p2281_p12 = scmp.lt.s32.totalorder %s2275_s18, %s2275_s18 }
  0x20   :  { %p2282_p13 = por %p2281_p12, %p2280_p11 }
  0x22   :  { %p2283_p0 = pnand %p2282_p13, %p2276_p10 }
  0x24   :  { %2286 = shalt.err (!%p2283_p0)
}
  0x25   :  { %55 = dma.hbm_to_vmem [thread:$0]  %s2990_s4, 1024, %s50_s16, [#allocation6], %s2339_s11, %s2339_s11, %s2340_s12  }
  0x26   :  { %s2295_s21 = scalar_lea.vmem %s62_s3, 1024  ;;  %p2300_p2 = scmp.lt.s32.totalorder %s62_s3, %s62_s3 }
  0x27   :  { %p2296_p1 = scmp.ne.s32.totalorder %s62_s3, %s2295_s21  ;;  %p2301_p3 = scmp.lt.s32.totalorder %s2295_s21, %s2295_s21 }
  0x29   :  { %p2302_p4 = por %p2301_p3, %p2300_p2 }
  0x2b   :  { %p2303_p5 = pnand %p2302_p4, %p2296_p1 }
  0x2d   :  { %2306 = shalt.err (!%p2303_p5)
}
  0x2e   :  { %67 = dma.hbm_to_vmem [thread:$0]  %s2991_s5, 1024, %s62_s3, [#allocation9], %s2339_s11, %s2339_s11, %s2340_s12  }
  0x2f   :  { %2327 = dma.done.wait [#allocation3], 1024  }
  0x30   :  { %2328 = vsyncadd [#allocation3], 4294966272 }
  0x31   :  { %2329 = dma.done.wait [#allocation6], 1280  }
  0x32   :  { %2330 = vsyncadd [#allocation6], 4294966016 }
  0x33   :  { %2331 = dma.done.wait [#allocation9], 1024  }
  0x34   :  { %2332 = vsyncadd [#allocation9], 4294966272  ;;  %v2343_v0 = vmov 1   ;;  %v2344_v1 = vmov 0   ;;  %v146_v2 = vld [vmem:[%s2987_s1 + $0xf0] sm:$0xff]  ;;  %v147_v3 = vld [vmem:[%s2987_s1 + $0xf8] sm:$0xff]  ;;  %v308_v28 = vlaneseq }
  0x35   :  { %2119 = vset.pattern.permute.xlu1 %v2343_v0  ;;  %2118 = vset.pattern.permute.xlu0 %v2344_v1  ;;  %v130_v4 = vld [vmem:[%s2987_s1 + $0x70] sm:$0xff]  ;;  %v131_v5 = vld [vmem:[%s2987_s1 + $0x78] sm:$0xff]  ;;  %v145_v6 = vld [vmem:[%s2987_s1 + $0xe8] sm:$0xff]  ;;  %vm2346_vm0 = vmmov 0  }
  0x36   :  { %465 = vperm.xlu1 %2119, %v146_v2   ;;  %300 = vperm.xlu0 %2118, %v146_v2   ;;  %v128_v7 = vld [vmem:[%s2987_s1 + $0x60] sm:$0xff]  ;;  %v143_v9 = vld [vmem:[%s2987_s1 + $0xd8] sm:$0xff]  ;;  %v126_v10 = vld [vmem:[%s2987_s1 + $0x50] sm:$0xff]  ;;  %v2512_v30 = vshrl.u32 %v308_v28, 7 }
  0x37   :  { %v144_v8 = vld [vmem:[%s2987_s1 + $0xe0] sm:$0xff]  ;;  %v141_v11 = vld [vmem:[%s2987_s1 + $0xc8] sm:$0xff]  ;;  %v139_v14 = vld [vmem:[%s2987_s1 + $0xb8] sm:$0xff] }
  0x38   :  { %v124_v12 = vld [vmem:[%s2987_s1 + $0x40] sm:$0xff]  ;;  %v129_v13 = vld [vmem:[%s2987_s1 + $0x68] sm:$0xff]  ;;  %v122_v15 = vld [vmem:[%s2987_s1 + $0x30] sm:$0xff]  ;;  %3001 = vst [vmem:[#allocation15_spill] sm:$0xff] %v2512_v30  ;;  %v474_v31 = vsub.s32 4, %v2512_v30  ;;  %v310_v32 = vsub.s32 3, %v2512_v30 }
  0x39   :  { %v142_v16 = vld [vmem:[%s2987_s1 + $0xd0] sm:$0xff]  ;;  %v2456_v17 = vld [vmem:[%s2987_s1 + $0xa8] sm:$0xff]  ;;  %v120_v18 = vld [vmem:[%s2987_s1 + $0x20] sm:$0xff] }
  0x3a   :  { %469 = vperm.xlu1 %2119, %v147_v3   ;;  %305 = vperm.xlu0 %2118, %v147_v3   ;;  %v2467_v19 = vld [vmem:[%s2987_s1 + $0x98] sm:$0xff]  ;;  %v118_v20 = vld [vmem:[%s2987_s1 + $0x10] sm:$0xff]  ;;  %v2480_v22 = vld [vmem:[%s2987_s1 + $0x88] sm:$0xff] }
  0x3b   :  { %v127_v21 = vld [vmem:[%s2987_s1 + $0x58] sm:$0xff]  ;;  %v116_v23 = vld [vmem:[%s2987_s1] sm:$0xff]  ;;  %v125_v25 = vld [vmem:[%s2987_s1 + $0x48] sm:$0xff] }
  0x3c   :  { %v140_v24 = vld [vmem:[%s2987_s1 + $0xc0] sm:$0xff]  ;;  %v138_v26 = vld [vmem:[%s2987_s1 + $0xb0] sm:$0xff]  ;;  %v123_v27 = vld [vmem:[%s2987_s1 + $0x38] sm:$0xff] }
  0x3d   :  { %v136_v29 = vld [vmem:[%s2987_s1 + $0xa0] sm:$0xff]  ;;  %v121_v40 = vld [vmem:[%s2987_s1 + $0x28] sm:$0xff]  ;;  %v134_v51 = vld [vmem:[%s2987_s1 + $0x90] sm:$0xff] }
  0x3e   :  { %2120 = vset.pattern.permute.xlu1 %v2344_v1  ;;  %220 = vperm.xlu0 %2118, %v130_v4   ;;  %v2520_v33 = vld [vmem:[%s2992_s6] sm:$0xff]  ;;  %v119_v58 = vld [vmem:[%s2987_s1 + $0x18] sm:$0xff] }
  0x3f   :  { %225 = vperm.xlu1 %2120, %v131_v5   ;;  %v2523_v34 = vrot.slane %v2520_v33, %v474_v31  ;;  %v2526_v35 = vrot.slane %v2520_v33, %v310_v32  ;;  %v132_v2 = vld [vmem:[%s2987_s1 + $0x80] sm:$0xff] }
  0x42   :  { %295 = vperm.xlu0 %2118, %v145_v6  }
  0x43   :  { %2121 = vset.pattern.permute.xlu1 %v2343_v0 }
  0x44   :  { %405 = vperm.xlu1 %2121, %v131_v5  }
  0x46   :  { %210 = vperm.xlu0 %2118, %v128_v7  }
  0x48   :  { %2122 = vset.pattern.permute.xlu1 %v2344_v1 }
  0x49   :  { %290 = vperm.xlu1 %2122, %v144_v8  }
  0x4a   :  { %285 = vperm.xlu0 %2118, %v143_v9  }
  0x4d   :  { %2123 = vset.pattern.permute.xlu1 %v2343_v0 }
  0x4e   :  { %457 = vperm.xlu1 %2123, %v144_v8   ;;  %200 = vperm.xlu0 %2118, %v126_v10  }
  0x52   :  { %461 = vperm.xlu1 %2123, %v145_v6   ;;  %275 = vperm.xlu0 %2118, %v141_v11  }
  0x56   :  { %2124 = vset.pattern.permute.xlu1 %v2344_v1  ;;  %190 = vperm.xlu0 %2118, %v124_v12  }
  0x57   :  { %215 = vperm.xlu1 %2124, %v129_v13  }
  0x5a   :  { %265 = vperm.xlu0 %2118, %v139_v14  }
  0x5b   :  { %2125 = vset.pattern.permute.xlu1 %v2343_v0 }
  0x5c   :  { %397 = vperm.xlu1 %2125, %v129_v13  }
  0x5e   :  { %180 = vperm.xlu0 %2118, %v122_v15  }
  0x60   :  { %2126 = vset.pattern.permute.xlu1 %v2344_v1 }
  0x61   :  { %280 = vperm.xlu1 %2126, %v142_v16  }
  0x62   :  { %255 = vperm.xlu0 %2118, %v2456_v17  }
  0x65   :  { %2127 = vset.pattern.permute.xlu1 %v2343_v0 }
  0x66   :  { %449 = vperm.xlu1 %2127, %v142_v16   ;;  %170 = vperm.xlu0 %2118, %v120_v18  }
  0x6a   :  { %453 = vperm.xlu1 %2127, %v143_v9   ;;  %245 = vperm.xlu0 %2118, %v2467_v19   ;;  %v117_v9 = vld [vmem:[%s2987_s1 + $0x8] sm:$0xff] }
  0x6e   :  { %2128 = vset.pattern.permute.xlu1 %v2344_v1  ;;  %160 = vperm.xlu0 %2118, %v118_v20  }
  0x6f   :  { %205 = vperm.xlu1 %2128, %v127_v21  }
  0x72   :  { %235 = vperm.xlu0 %2118, %v2480_v22  }
  0x73   :  { %2129 = vset.pattern.permute.xlu1 %v2343_v0 }
  0x74   :  { %389 = vperm.xlu1 %2129, %v127_v21  }
  0x76   :  { %150 = vperm.xlu0 %2118, %v116_v23  }
  0x78   :  { %2130 = vset.pattern.permute.xlu1 %v2344_v1 }
  0x79   :  { %270 = vperm.xlu1 %2130, %v140_v24  }
  0x7a   :  { %2148 = vset.pattern.permute.xlu0 %v2343_v0 }
  0x7b   :  { %401 = vperm.xlu0 %2148, %v130_v4  }
  0x7d   :  { %2131 = vset.pattern.permute.xlu1 %v2343_v0 }
  0x7e   :  { %441 = vperm.xlu1 %2131, %v140_v24  }
  0x7f   :  { %393 = vperm.xlu0 %2148, %v128_v7  }
  0x82   :  { %445 = vperm.xlu1 %2131, %v141_v11  }
  0x83   :  { %385 = vperm.xlu0 %2148, %v126_v10  }
  0x86   :  { %2132 = vset.pattern.permute.xlu1 %v2344_v1 }
  0x87   :  { %195 = vperm.xlu1 %2132, %v125_v25   ;;  %377 = vperm.xlu0 %2148, %v124_v12  }
  0x8b   :  { %2133 = vset.pattern.permute.xlu1 %v2343_v0  ;;  %369 = vperm.xlu0 %2148, %v122_v15   ;;  %v2581_v15 = vld [vmem:[%s2986_s0 + $0x4] ss:$8 sps:$4 sm:$0xff]  }
  0x8c   :  { %381 = vperm.xlu1 %2133, %v125_v25   ;;  %752 = vmatprep.mubr.bf16.mxu0 %v2581_v15 }
  0x8f   :  { %361 = vperm.xlu0 %2148, %v120_v18  }
  0x90   :  { %2134 = vset.pattern.permute.xlu1 %v2344_v1 }
  0x91   :  { %260 = vperm.xlu1 %2134, %v138_v26  }
  0x93   :  { %353 = vperm.xlu0 %2148, %v118_v20  }
  0x95   :  { %2135 = vset.pattern.permute.xlu1 %v2343_v0 }
  0x96   :  { %433 = vperm.xlu1 %2135, %v138_v26  }
  0x97   :  { %345 = vperm.xlu0 %2148, %v116_v23  }
  0x9a   :  { %437 = vperm.xlu1 %2135, %v139_v14  }
  0x9e   :  { %2136 = vset.pattern.permute.xlu1 %v2344_v1 }
  0x9f   :  { %185 = vperm.xlu1 %2136, %v123_v27  }
  0xa3   :  { %2137 = vset.pattern.permute.xlu1 %v2343_v0 }
  0xa4   :  { %373 = vperm.xlu1 %2137, %v123_v27  }
  0xa8   :  { %2138 = vset.pattern.permute.xlu1 %v2344_v1 }
  0xa9   :  { %250 = vperm.xlu1 %2138, %v136_v29  }
  0xad   :  { %2139 = vset.pattern.permute.xlu1 %v2343_v0 }
  0xae   :  { %425 = vperm.xlu1 %2139, %v136_v29  }
  0xb1   :  { %v466_v36 = vpop.permute.xlu1 %465  ;;  %v301_v37 = vpop.permute.xlu0 %300 }
  0xb2   :  { %429 = vperm.xlu1 %2139, %v2456_v17   ;;  %v506_v38 = vmul.f32 %v2523_v34, %v466_v36  ;;  %v342_v39 = vmul.f32 %v2526_v35, %v301_v37 }
  0xb4   :  { %v538_v45 = vadd.f32 %v506_v38, %v342_v39 }
  0xb5   :  { %v470_v41 = vpop.permute.xlu1 %469  ;;  %v306_v42 = vpop.permute.xlu0 %305 }
  0xb6   :  { %v507_v43 = vmul.f32 %v2523_v34, %v470_v41  ;;  %v343_v44 = vmul.f32 %v2526_v35, %v306_v42  ;;  %2140 = vset.pattern.permute.xlu1 %v2344_v1 }
  0xb7   :  { %175 = vperm.xlu1 %2140, %v121_v40  }
  0xb8   :  { %v539_v46 = vadd.f32 %v507_v43, %v343_v44 }
  0xb9   :  { %v221_v47 = vpop.permute.xlu0 %220 }
  0xba   :  { %v226_v48 = vpop.permute.xlu1 %225  ;;  %v555_v49 = vpack.c.bf16 %v539_v46, %v538_v45 }
  0xbb   :  { %2141 = vset.pattern.permute.xlu1 %v2343_v0  ;;  %v327_v23 = vmul.f32 %v2526_v35, %v226_v48 }
  0xbc   :  { %365 = vperm.xlu1 %2141, %v121_v40   ;;  %1729 = vmatprep.subr.bf16.mxu0 %v555_v49 }
  0xbd   :  { %v296_v50 = vpop.permute.xlu0 %295 }
  0xbf   :  { %v406_v52 = vpop.permute.xlu1 %405 }
  0xc0   :  { %2142 = vset.pattern.permute.xlu1 %v2344_v1  ;;  %v491_v20 = vmul.f32 %v2523_v34, %v406_v52 }
  0xc1   :  { %240 = vperm.xlu1 %2142, %v134_v51   ;;  %v211_v53 = vpop.permute.xlu0 %210 }
  0xc2   :  { %v523_v29 = vadd.f32 %v491_v20, %v327_v23  ;;  %v324_v31 = vmul.f32 %v2526_v35, %v211_v53 }
  0xc4   :  { %v291_v54 = vpop.permute.xlu1 %290 }
  0xc5   :  { %2143 = vset.pattern.permute.xlu1 %v2343_v0  ;;  %v286_v55 = vpop.permute.xlu0 %285  ;;  %v340_v25 = vmul.f32 %v2526_v35, %v291_v54 }
  0xc6   :  { %417 = vperm.xlu1 %2143, %v134_v51   ;;  %v339_v26 = vmul.f32 %v2526_v35, %v286_v55 }
  0xc9   :  { %v458_v56 = vpop.permute.xlu1 %457  ;;  %v2543_v57 = vpop.permute.xlu0 %200 }
  0xca   :  { %421 = vperm.xlu1 %2143, %v2467_v19   ;;  %v504_v21 = vmul.f32 %v2523_v34, %v458_v56  ;;  %v322_v48 = vmul.f32 %v2526_v35, %v2543_v57 }
  0xcc   :  { %v536_v38 = vadd.f32 %v504_v21, %v340_v25 }
  0xcd   :  { %v462_v59 = vpop.permute.xlu1 %461  ;;  %v276_v60 = vpop.permute.xlu0 %275 }
  0xce   :  { %2144 = vset.pattern.permute.xlu1 %v2344_v1  ;;  %v505_v18 = vmul.f32 %v2523_v34, %v462_v59  ;;  %v337_v44 = vmul.f32 %v2526_v35, %v276_v60 }
  0xcf   :  { %165 = vperm.xlu1 %2144, %v119_v58  }
  0xd1   :  { %v2550_v61 = vpop.permute.xlu0 %190 }
  0xd2   :  { %v216_v62 = vpop.permute.xlu1 %215 }
  0xd3   :  { %2145 = vset.pattern.permute.xlu1 %v2343_v0  ;;  %v325_v41 = vmul.f32 %v2526_v35, %v216_v62 }
  0xd4   :  { %357 = vperm.xlu1 %2145, %v119_v58  }
  0xd5   :  { %v2553_v63 = vpop.permute.xlu0 %265 }
  0xd7   :  { %v398_v3 = vpop.permute.xlu1 %397 }
  0xd8   :  { %2146 = vset.pattern.permute.xlu1 %v2344_v1  ;;  %v489_v32 = vmul.f32 %v2523_v34, %v398_v3 }
  0xd9   :  { %230 = vperm.xlu1 %2146, %v132_v2   ;;  %v2559_v4 = vpop.permute.xlu0 %180 }
  0xda   :  { %v521_v49 = vadd.f32 %v489_v32, %v325_v41 }
  0xdc   :  { %v281_v5 = vpop.permute.xlu1 %280 }
  0xdd   :  { %2147 = vset.pattern.permute.xlu1 %v2343_v0  ;;  %v2562_v6 = vpop.permute.xlu0 %255  ;;  %v338_v45 = vmul.f32 %v2526_v35, %v281_v5 }
  0xde   :  { %409 = vperm.xlu1 %2147, %v132_v2  }
  0xe1   :  { %v450_v7 = vpop.permute.xlu1 %449  ;;  %v2564_v8 = vpop.permute.xlu0 %170 }
  0xe2   :  { %413 = vperm.xlu1 %2147, %v2480_v22   ;;  %v502_v39 = vmul.f32 %v2523_v34, %v450_v7 }
  0xe4   :  { %v534_v53 = vadd.f32 %v502_v39, %v338_v45  ;;  %v318_v39 = vmul.f32 %v2526_v35, %v2559_v4 }
  0xe5   :  { %v454_v10 = vpop.permute.xlu1 %453  ;;  %v2570_v11 = vpop.permute.xlu0 %245 }
  0xe6   :  { %2149 = vset.pattern.permute.xlu1 %v2344_v1  ;;  %v341_v1 = vmul.f32 %v2526_v35, %v296_v50  ;;  %v503_v28 = vmul.f32 %v2523_v34, %v454_v10 }
  0xe7   :  { %155 = vperm.xlu1 %2149, %v117_v9  }
  0xe8   :  { %v537_v27 = vadd.f32 %v505_v18, %v341_v1  ;;  %v535_v46 = vadd.f32 %v503_v28, %v339_v26  ;;  %v320_v1 = vmul.f32 %v2526_v35, %v2550_v61  ;;  %v335_v61 = vmul.f32 %v2526_v35, %v2553_v63 }
  0xe9   :  { %v2573_v12 = vpop.permute.xlu0 %160 }
  0xea   :  { %v206_v13 = vpop.permute.xlu1 %205  ;;  %v553_v2 = vpack.c.bf16 %v535_v46, %v534_v53 }
  0xeb   :  { %2150 = vset.pattern.permute.xlu1 %v2343_v0  ;;  %v326_v0 = vmul.f32 %v2526_v35, %v221_v47  ;;  %v554_v47 = vpack.c.bf16 %v537_v27, %v536_v38  ;;  %v323_v58 = vmul.f32 %v2526_v35, %v206_v13 }
  0xec   :  { %349 = vperm.xlu1 %2150, %v117_v9  }
  0xed   :  { %v2576_v14 = vpop.permute.xlu0 %235 }
  0xef   :  { %v390_v16 = vpop.permute.xlu1 %389 }
  0xf0   :  { %v487_v50 = vmul.f32 %v2523_v34, %v390_v16 }
  0xf1   :  { %v2584_v17 = vpop.permute.xlu0 %150 }
  0xf2   :  { %v519_v3 = vadd.f32 %v487_v50, %v323_v58  ;;  %v333_v50 = vmul.f32 %v2526_v35, %v2562_v6 }
  0xf4   :  { %v271_v19 = vpop.permute.xlu1 %270 }
  0xf5   :  { %v336_v57 = vmul.f32 %v2526_v35, %v271_v19 }
  0xf6   :  { %v402_v22 = vpop.permute.xlu0 %401 }
  0xf7   :  { %v490_v24 = vmul.f32 %v2523_v34, %v402_v22 }
  0xf9   :  { %v522_v36 = vadd.f32 %v490_v24, %v326_v0  ;;  %v442_v37 = vpop.permute.xlu1 %441 }
  0xfa   :  { %v394_v40 = vpop.permute.xlu0 %393  ;;  %v500_v54 = vmul.f32 %v2523_v34, %v442_v37 }
  0xfb   :  { %v488_v42 = vmul.f32 %v2523_v34, %v394_v40  ;;  %v547_v43 = vpack.c.bf16 %v523_v29, %v522_v36 }
  0xfc   :  { %v532_v7 = vadd.f32 %v500_v54, %v336_v57 }
  0xfd   :  { %v520_v51 = vadd.f32 %v488_v42, %v324_v31  ;;  %v446_v52 = vpop.permute.xlu1 %445  ;;  %1730 = vmatpush3.bf16.msra.mxu0 %v547_v43 }
  0xfe   :  { %v501_v55 = vmul.f32 %v2523_v34, %v446_v52  ;;  %v386_v56 = vpop.permute.xlu0 %385  ;;  %1731 = vmatprep.subr.bf16.mxu0 %v554_v47 }
  0xff   :  { %v486_v59 = vmul.f32 %v2523_v34, %v386_v56  ;;  %v546_v60 = vpack.c.bf16 %v521_v49, %v520_v51 }
 0x100   :  { %v533_v62 = vadd.f32 %v501_v55, %v337_v44 }
 0x101   :  { %v518_v5 = vadd.f32 %v486_v59, %v322_v48  ;;  %1732 = vmatpush3.bf16.msra.mxu0 %v546_v60  ;;  %v316_v60 = vmul.f32 %v2526_v35, %v2564_v8 }
 0x102   :  { %v196_v9 = vpop.permute.xlu1 %195  ;;  %1733 = vmatprep.subr.bf16.mxu0 %v553_v2  ;;  %v378_v10 = vpop.permute.xlu0 %377  ;;  %v552_v18 = vpack.c.bf16 %v533_v62, %v532_v7 }
 0x103   :  { %v545_v16 = vpack.c.bf16 %v519_v3, %v518_v5  ;;  %v484_v13 = vmul.f32 %v2523_v34, %v378_v10  ;;  %v321_v19 = vmul.f32 %v2526_v35, %v196_v9 }
 0x105   :  { %1734 = vmatpush3.bf16.msra.mxu0 %v545_v16  ;;  %v516_v20 = vadd.f32 %v484_v13, %v320_v1  ;;  %v331_v16 = vmul.f32 %v2526_v35, %v2570_v11 }
 0x106   :  { %1735 = vmatprep.subr.bf16.mxu0 %v552_v18  ;;  %v370_v38 = vpop.permute.xlu0 %369 }
 0x107   :  { %v382_v0 = vpop.permute.xlu1 %381  ;;  %v482_v40 = vmul.f32 %v2523_v34, %v370_v38 }
 0x108   :  { %v485_v21 = vmul.f32 %v2523_v34, %v382_v0 }
 0x109   :  { %v514_v43 = vadd.f32 %v482_v40, %v318_v39 }
 0x10a   :  { %v517_v22 = vadd.f32 %v485_v21, %v321_v19  ;;  %v362_v56 = vpop.permute.xlu0 %361 }
 0x10b   :  { %v480_v58 = vmul.f32 %v2523_v34, %v362_v56  ;;  %v2712_v56 = vld [vmem:[%s2986_s0 + $0x54] ss:$8 sps:$4 sm:$0xff]  }
 0x10c   :  { %v261_v23 = vpop.permute.xlu1 %260  ;;  %v544_v24 = vpack.c.bf16 %v517_v22, %v516_v20 }
 0x10d   :  { %v334_v28 = vmul.f32 %v2526_v35, %v261_v23  ;;  %v512_v62 = vadd.f32 %v480_v58, %v316_v60  ;;  %v314_v23 = vmul.f32 %v2526_v35, %v2573_v12  ;;  %v2719_v58 = vld [vmem:[%s2986_s0 + $0x50] ss:$8 sps:$4 sm:$0xff]   ;;  %v2731_v60 = vld [vmem:[%s2986_s0 + $0x60] ss:$8 sps:$4 sm:$0xff]  }
 0x10e   :  { %1736 = vmatpush3.bf16.msra.mxu0 %v544_v24  ;;  %v354_v20 = vpop.permute.xlu0 %353 }
 0x10f   :  { %v478_v21 = vmul.f32 %v2523_v34, %v354_v20  ;;  %v2803_v20 = vld [vmem:[%s2986_s0 + $0xc0] ss:$8 sps:$4 sm:$0xff]  }
 0x111   :  { %v434_v25 = vpop.permute.xlu1 %433 }
 0x112   :  { %v498_v26 = vmul.f32 %v2523_v34, %v434_v25  ;;  %v510_v25 = vadd.f32 %v478_v21, %v314_v23  ;;  %v2808_v21 = vld [vmem:[%s2986_s0 + $0xd4] ss:$8 sps:$4 sm:$0xff]   ;;  %v2820_v23 = vld [vmem:[%s2986_s0 + $0xe4] ss:$8 sps:$4 sm:$0xff]  }
 0x113   :  { %3003 = vst [vmem:[#allocation17_spill] sm:$0xff] %v2820_v23 }
 0x114   :  { %v530_v31 = vadd.f32 %v498_v26, %v334_v28 }
 0x115   :  { %v438_v27 = vpop.permute.xlu1 %437 }
 0x116   :  { %v499_v29 = vmul.f32 %v2523_v34, %v438_v27 }
 0x118   :  { %v531_v32 = vadd.f32 %v499_v29, %v335_v61 }
 0x11a   :  { %v186_v36 = vpop.permute.xlu1 %185  ;;  %v551_v37 = vpack.c.bf16 %v531_v32, %v530_v31  ;;  %v329_v32 = vmul.f32 %v2526_v35, %v2576_v14 }
 0x11b   :  { %v319_v42 = vmul.f32 %v2526_v35, %v186_v36 }
 0x11c   :  { %1737 = vmatprep.subr.bf16.mxu0 %v551_v37 }
 0x11f   :  { %v374_v41 = vpop.permute.xlu1 %373 }
 0x120   :  { %v483_v63 = vmul.f32 %v2523_v34, %v374_v41  ;;  %v346_v41 = vpop.permute.xlu0 %345 }
 0x122   :  { %v515_v44 = vadd.f32 %v483_v63, %v319_v42  ;;  %v476_v42 = vmul.f32 %v2523_v34, %v346_v41 }
 0x124   :  { %v251_v45 = vpop.permute.xlu1 %250  ;;  %v543_v46 = vpack.c.bf16 %v515_v44, %v514_v43  ;;  %v312_v43 = vmul.f32 %v2526_v35, %v2584_v17  ;;  %v2676_v17 = vld [vmem:[%s2986_s0 + $0x24] ss:$8 sps:$4 sm:$0xff]  }
 0x125   :  { %v332_v4 = vmul.f32 %v2526_v35, %v251_v45  ;;  %v2199_v45 = vld [vmem:[#allocation2 + $0x38] sm:$0xff]  }
 0x126   :  { %1738 = vmatpush3.bf16.msra.mxu0 %v543_v46  ;;  %v2200_v46 = vld [vmem:[#allocation2 + $0x30] sm:$0xff]   ;;  %2017 = vmatprep.subr.bf16.mxu1 %v2199_v45 }
 0x127   :  { %2018 = vmatpush3.bf16.msra.mxu1 %v2199_v45 }
 0x128   :  { %2019 = vmatprep.subr.bf16.mxu1 %v2200_v46 }
 0x129   :  { %v426_v47 = vpop.permute.xlu1 %425 }
 0x12a   :  { %v496_v48 = vmul.f32 %v2523_v34, %v426_v47  ;;  %v508_v47 = vadd.f32 %v476_v42, %v312_v43 }
 0x12b   :  { %2020 = vmatpush3.bf16.msra.mxu1 %v2200_v46 }
 0x12c   :  { %v528_v52 = vadd.f32 %v496_v48, %v332_v4  ;;  %v2201_v4 = vld [vmem:[#allocation2 + $0x28] sm:$0xff]  }
 0x12d   :  { %v430_v49 = vpop.permute.xlu1 %429  ;;  %2021 = vmatprep.subr.bf16.mxu1 %v2201_v4 }
 0x12e   :  { %v497_v51 = vmul.f32 %v2523_v34, %v430_v49 }
 0x12f   :  { %2022 = vmatpush3.bf16.msra.mxu1 %v2201_v4 }
 0x130   :  { %v529_v53 = vadd.f32 %v497_v51, %v333_v50  ;;  %v2659_v50 = vld [vmem:[%s2986_s0] ss:$8 sps:$4 sm:$0xff]  }
 0x131   :  { %v2683_v51 = vld [vmem:[%s2986_s0 + $0x20] ss:$8 sps:$4 sm:$0xff]  }
 0x132   :  { %v176_v54 = vpop.permute.xlu1 %175  ;;  %v550_v55 = vpack.c.bf16 %v529_v53, %v528_v52  ;;  %v2688_v52 = vld [vmem:[%s2986_s0 + $0x34] ss:$8 sps:$4 sm:$0xff]   ;;  %v2695_v53 = vld [vmem:[%s2986_s0 + $0x30] ss:$8 sps:$4 sm:$0xff]  }
 0x133   :  { %v317_v57 = vmul.f32 %v2526_v35, %v176_v54  ;;  %v2700_v54 = vld [vmem:[%s2986_s0 + $0x44] ss:$8 sps:$4 sm:$0xff]  }
 0x134   :  { %1739 = vmatprep.subr.bf16.mxu0 %v550_v55  ;;  %v2707_v55 = vld [vmem:[%s2986_s0 + $0x40] ss:$8 sps:$4 sm:$0xff]  }
 0x137   :  { %v366_v59 = vpop.permute.xlu1 %365 }
 0x138   :  { %v481_v6 = vmul.f32 %v2523_v34, %v366_v59  ;;  %v2724_v59 = vld [vmem:[%s2986_s0 + $0x64] ss:$8 sps:$4 sm:$0xff]  }
 0x13a   :  { %v513_v2 = vadd.f32 %v481_v6, %v317_v57  ;;  %v2736_v57 = vld [vmem:[%s2986_s0 + $0x74] ss:$8 sps:$4 sm:$0xff]   ;;  %v2743_v6 = vld [vmem:[%s2986_s0 + $0x70] ss:$8 sps:$4 sm:$0xff]  }
 0x13c   :  { %v241_v3 = vpop.permute.xlu1 %240  ;;  %v542_v5 = vpack.c.bf16 %v513_v2, %v512_v62  ;;  %v2748_v62 = vld [vmem:[%s2986_s0 + $0x84] ss:$8 sps:$4 sm:$0xff]   ;;  %v2755_v2 = vld [vmem:[%s2986_s0 + $0x80] ss:$8 sps:$4 sm:$0xff]  }
 0x13d   :  { %v330_v1 = vmul.f32 %v2526_v35, %v241_v3  ;;  %v2760_v3 = vld [vmem:[%s2986_s0 + $0x94] ss:$8 sps:$4 sm:$0xff]  }
 0x13e   :  { %1740 = vmatpush3.bf16.msra.mxu0 %v542_v5  ;;  %v2202_v5 = vld [vmem:[#allocation2 + $0x20] sm:$0xff]  }
 0x13f   :  { %2023 = vmatprep.subr.bf16.mxu1 %v2202_v5 }
 0x140   :  { %2024 = vmatpush3.bf16.msra.mxu1 %v2202_v5 }
 0x141   :  { %v418_v7 = vpop.permute.xlu1 %417 }
 0x142   :  { %v494_v9 = vmul.f32 %v2523_v34, %v418_v7  ;;  %v2767_v7 = vld [vmem:[%s2986_s0 + $0x90] ss:$8 sps:$4 sm:$0xff]  }
 0x144   :  { %v526_v13 = vadd.f32 %v494_v9, %v330_v1  ;;  %v2772_v9 = vld [vmem:[%s2986_s0 + $0xa4] ss:$8 sps:$4 sm:$0xff]   ;;  %v2779_v1 = vld [vmem:[%s2986_s0 + $0xa0] ss:$8 sps:$4 sm:$0xff]  }
 0x145   :  { %v422_v10 = vpop.permute.xlu1 %421 }
 0x146   :  { %v495_v8 = vmul.f32 %v2523_v34, %v422_v10  ;;  %v2203_v10 = vld [vmem:[#allocation2 + $0x18] sm:$0xff]  }
 0x147   :  { %2025 = vmatprep.subr.bf16.mxu1 %v2203_v10 }
 0x148   :  { %v527_v18 = vadd.f32 %v495_v8, %v331_v16  ;;  %2026 = vmatpush3.bf16.msra.mxu1 %v2203_v10  ;;  %v2204_v16 = vld [vmem:[#allocation2 + $0x10] sm:$0xff]  }
 0x149   :  { %2027 = vmatprep.subr.bf16.mxu1 %v2204_v16  ;;  %v2784_v8 = vld [vmem:[%s2986_s0 + $0xb4] ss:$8 sps:$4 sm:$0xff]  }
 0x14a   :  { %v166_v0 = vpop.permute.xlu1 %165  ;;  %v549_v19 = vpack.c.bf16 %v527_v18, %v526_v13  ;;  %v2205_v13 = vld [vmem:[#allocation2 + $0x8] sm:$0xff]   ;;  %v2206_v18 = vld [vmem:[#allocation2] sm:$0xff]  }
 0x14b   :  { %v315_v24 = vmul.f32 %v2526_v35, %v166_v0  ;;  %v2791_v0 = vld [vmem:[%s2986_s0 + $0xb0] ss:$8 sps:$4 sm:$0xff]  }
 0x14c   :  { %1741 = vmatprep.subr.bf16.mxu0 %v549_v19  ;;  %2028 = vmatpush3.bf16.msra.mxu1 %v2204_v16  ;;  %v2796_v19 = vld [vmem:[%s2986_s0 + $0xc4] ss:$8 sps:$4 sm:$0xff]  }
 0x14d   :  { %2029 = vmatprep.subr.bf16.mxu1 %v2205_v13 }
 0x14f   :  { %v358_v22 = vpop.permute.xlu1 %357 }
 0x150   :  { %v479_v11 = vmul.f32 %v2523_v34, %v358_v22  ;;  %2030 = vmatpush3.bf16.msra.mxu1 %v2205_v13  ;;  %v2815_v22 = vld [vmem:[%s2986_s0 + $0xd0] ss:$8 sps:$4 sm:$0xff]  }
 0x151   :  { %2031 = vmatprep.subr.bf16.mxu1 %v2206_v18  ;;  %3002 = vst [vmem:[#allocation16_spill] sm:$0xff] %v2815_v22 }
 0x152   :  { %v511_v26 = vadd.f32 %v479_v11, %v315_v24  ;;  %v2827_v24 = vld [vmem:[%s2986_s0 + $0xe0] ss:$8 sps:$4 sm:$0xff]   ;;  %v2832_v11 = vld [vmem:[%s2986_s0 + $0xf4] ss:$8 sps:$4 sm:$0xff]  }
 0x153   :  { %3004 = vst [vmem:[#allocation18_spill] sm:$0xff] %v2827_v24  ;;  %3005 = vst [vmem:[#allocation19_spill] sm:$0xff] %v2832_v11 }
 0x154   :  { %v231_v27 = vpop.permute.xlu1 %230  ;;  %v541_v61 = vpack.c.bf16 %v511_v26, %v510_v25  ;;  %2032 = vmatpush3.bf16.msra.mxu1 %v2206_v18  ;;  %v2839_v25 = vld [vmem:[%s2986_s0 + $0xf0] ss:$8 sps:$4 sm:$0xff]   ;;  %v558_v26 = vsub.s32 0, %v2512_v30 }
 0x155   :  { %v328_v36 = vmul.f32 %v2526_v35, %v231_v27  ;;  %3006 = vst [vmem:[#allocation20_spill] sm:$0xff] %v2839_v25 }
 0x156   :  { %1742 = vmatpush3.bf16.msra.mxu0 %v541_v61 }
 0x159   :  { %v410_v28 = vpop.permute.xlu1 %409 }
 0x15a   :  { %v492_v29 = vmul.f32 %v2523_v34, %v410_v28 }
 0x15c   :  { %v524_v37 = vadd.f32 %v492_v29, %v328_v36  ;;  %v2844_v29 = vrot.slane %v2520_v33, %v558_v26 }
 0x15d   :  { %v414_v31 = vpop.permute.xlu1 %413 }
 0x15e   :  { %v493_v12 = vmul.f32 %v2523_v34, %v414_v31 }
 0x160   :  { %v525_v38 = vadd.f32 %v493_v12, %v329_v32 }
 0x162   :  { %v156_v39 = vpop.permute.xlu1 %155  ;;  %v548_v40 = vpack.c.bf16 %v525_v38, %v524_v37 }
 0x163   :  { %v313_v44 = vmul.f32 %v2526_v35, %v156_v39  ;;  %v2664_v35 = vld [vmem:[%s2986_s0 + $0x14] ss:$8 sps:$4 sm:$0xff]  }
 0x164   :  { %1743 = vmatprep.subr.bf16.mxu0 %v548_v40 }
 0x167   :  { %v350_v63 = vpop.permute.xlu1 %349 }
 0x168   :  { %v477_v14 = vmul.f32 %v2523_v34, %v350_v63  ;;  %v2671_v34 = vld [vmem:[%s2986_s0 + $0x10] ss:$8 sps:$4 sm:$0xff]  }
 0x16a   :  { %v509_v48 = vadd.f32 %v477_v14, %v313_v44 }
 0x16c   :  { %v540_v49 = vpack.c.bf16 %v509_v48, %v508_v47 }
 0x16e   :  { %1744 = vmatpush3.bf16.msra.mxu0 %v540_v49 }
 0x171   :  { %753 = vmatmul.mubr.bf16.vlgmr.msra.gmra.mxu0 %v2659_v50 }
 0x172   :  { %760 = vmatprep.mubr.bf16.mxu0 %v2664_v35 }
 0x179   :  { %761 = vmatmul.mubr.bf16.gmra.mxu0 %v2671_v34 }
 0x17a   :  { %768 = vmatprep.mubr.bf16.mxu0 %v2676_v17 }
 0x181   :  { %769 = vmatmul.mubr.bf16.gmra.mxu0 %v2683_v51 }
 0x182   :  { %776 = vmatprep.mubr.bf16.mxu0 %v2688_v52 }
 0x189   :  { %777 = vmatmul.mubr.bf16.gmra.mxu0 %v2695_v53 }
 0x18a   :  { %784 = vmatprep.mubr.bf16.mxu0 %v2700_v54 }
 0x191   :  { %785 = vmatmul.mubr.bf16.gmra.mxu0 %v2707_v55 }
 0x192   :  { %792 = vmatprep.mubr.bf16.mxu0 %v2712_v56 }
 0x199   :  { %793 = vmatmul.mubr.bf16.gmra.mxu0 %v2719_v58 }
 0x19a   :  { %800 = vmatprep.mubr.bf16.mxu0 %v2724_v59 }
 0x1a1   :  { %801 = vmatmul.mubr.bf16.gmra.mxu0 %v2731_v60 }
 0x1a2   :  { %808 = vmatprep.mubr.bf16.mxu0 %v2736_v57 }
 0x1a9   :  { %809 = vmatmul.mubr.bf16.gmra.mxu0 %v2743_v6 }
 0x1aa   :  { %816 = vmatprep.mubr.bf16.mxu0 %v2748_v62 }
 0x1b1   :  { %817 = vmatmul.mubr.bf16.gmra.mxu0 %v2755_v2 }
 0x1b2   :  { %824 = vmatprep.mubr.bf16.mxu0 %v2760_v3 }
 0x1b9   :  { %825 = vmatmul.mubr.bf16.gmra.mxu0 %v2767_v7 }
 0x1ba   :  { %832 = vmatprep.mubr.bf16.mxu0 %v2772_v9 }
 0x1c1   :  { %833 = vmatmul.mubr.bf16.gmra.mxu0 %v2779_v1 }
 0x1c2   :  { %840 = vmatprep.mubr.bf16.mxu0 %v2784_v8 }
 0x1c9   :  { %841 = vmatmul.mubr.bf16.gmra.mxu0 %v2791_v0 }
 0x1ca   :  { %848 = vmatprep.mubr.bf16.mxu0 %v2796_v19 }
 0x1d1   :  { %849 = vmatmul.mubr.bf16.gmra.mxu0 %v2803_v20 }
 0x1d2   :  { %856 = vmatprep.mubr.bf16.mxu0 %v2808_v21 }
 0x1d9   :  { %857 = vmatmul.mubr.bf16.gmra.mxu0 %v2815_v22 }
 0x1da   :  { %864 = vmatprep.mubr.bf16.mxu0 %v2820_v23 }
 0x1e1   :  { %865 = vmatmul.mubr.bf16.gmra.mxu0 %v2827_v24 }
 0x1e2   :  { %872 = vmatprep.mubr.bf16.mxu0 %v2832_v11 }
 0x1e9   :  { %873 = vmatmul.mubr.bf16.gmra.mxu0 %v2839_v25 }
 0x231   :  { %v1745_v27 = vpop.f32.mrf.mxu0 }
 0x233   :  { %v1746_v61 = vpop.f32.mrf.mxu0 }
 0x234   :  { %v1747_v28 = vadd.f32 %v1746_v61, %v1745_v27 }
 0x235   :  { %v1748_v31 = vpop.f32.mrf.mxu0 }
 0x236   :  { %v755_v12 = vadd.f32 %v1747_v28, %v2844_v29 }
 0x237   :  { %v1749_v32 = vpop.f32.mrf.mxu0 }
 0x238   :  { %v1750_v36 = vadd.f32 %v1749_v32, %v1748_v31  ;;  %v881_v41 = vmax.f32 %v755_v12, 0.0 }
 0x239   :  { %v1751_v37 = vpop.f32.mrf.mxu0 }
 0x23a   :  { %v758_v38 = vadd.f32 %v1750_v36, %v2844_v29 }
 0x23b   :  { %v1752_v39 = vpop.f32.mrf.mxu0 }
 0x23c   :  { %v1753_v40 = vadd.f32 %v1752_v39, %v1751_v37  ;;  %v882_v42 = vmax.f32 %v758_v38, 0.0 }
 0x23d   :  { %v1754_v63 = vpop.f32.mrf.mxu0 }
 0x23e   :  { %v913_v43 = vpack.c.bf16 %v882_v42, %v881_v41  ;;  %v763_v14 = vadd.f32 %v1753_v40, %v2844_v29 }
 0x23f   :  { %v1755_v44 = vpop.f32.mrf.mxu0 }
 0x240   :  { %v1756_v45 = vadd.f32 %v1755_v44, %v1754_v63  ;;  %2033 = vmatprep.mubr.bf16.mxu1 %v913_v43  ;;  %v883_v48 = vmax.f32 %v763_v14, 0.0 }
 0x241   :  { %v1757_v33 = vpop.f32.mrf.mxu0 }
 0x242   :  { %v766_v46 = vadd.f32 %v1756_v45, %v2844_v29 }
 0x243   :  { %v1758_v47 = vpop.f32.mrf.mxu0 }
 0x244   :  { %v884_v49 = vmax.f32 %v766_v46, 0.0  ;;  %v1759_v4 = vadd.f32 %v1758_v47, %v1757_v33 }
 0x245   :  { %v1760_v5 = vpop.f32.mrf.mxu0 }
 0x246   :  { %v914_v10 = vpack.c.bf16 %v884_v49, %v883_v48  ;;  %v771_v13 = vadd.f32 %v1759_v4, %v2844_v29 }
 0x247   :  { %v1761_v16 = vpop.f32.mrf.mxu0 }
 0x248   :  { %v1762_v18 = vadd.f32 %v1761_v16, %v1760_v5  ;;  %2034 = vmatmul.mubr.bf16.vlgmr.msra.gmra.mxu1 %v914_v10  ;;  %v885_v28 = vmax.f32 %v771_v13, 0.0 }
 0x249   :  { %v1763_v26 = vpop.f32.mrf.mxu0 }
 0x24a   :  { %v774_v27 = vadd.f32 %v1762_v18, %v2844_v29 }
 0x24b   :  { %v1764_v61 = vpop.f32.mrf.mxu0 }
 0x24c   :  { %v886_v31 = vmax.f32 %v774_v27, 0.0  ;;  %v1765_v32 = vadd.f32 %v1764_v61, %v1763_v26 }
 0x24d   :  { %v1766_v36 = vpop.f32.mrf.mxu0 }
 0x24e   :  { %v915_v12 = vpack.c.bf16 %v886_v31, %v885_v28  ;;  %v779_v38 = vadd.f32 %v1765_v32, %v2844_v29 }
 0x24f   :  { %v1767_v37 = vpop.f32.mrf.mxu0 }
 0x250   :  { %v1768_v39 = vadd.f32 %v1767_v37, %v1766_v36  ;;  %2037 = vmatprep.mubr.bf16.mxu1 %v915_v12  ;;  %v887_v63 = vmax.f32 %v779_v38, 0.0 }
 0x251   :  { %v1769_v40 = vpop.f32.mrf.mxu0 }
 0x252   :  { %v782_v41 = vadd.f32 %v1768_v39, %v2844_v29 }
 0x253   :  { %v1770_v42 = vpop.f32.mrf.mxu0 }
 0x254   :  { %v888_v43 = vmax.f32 %v782_v41, 0.0  ;;  %v1771_v44 = vadd.f32 %v1770_v42, %v1769_v40 }
 0x255   :  { %v1772_v14 = vpop.f32.mrf.mxu0 }
 0x256   :  { %v916_v45 = vpack.c.bf16 %v888_v43, %v887_v63  ;;  %v787_v46 = vadd.f32 %v1771_v44, %v2844_v29 }
 0x257   :  { %v1773_v33 = vpop.f32.mrf.mxu0 }
 0x258   :  { %v1774_v47 = vadd.f32 %v1773_v33, %v1772_v14  ;;  %2038 = vmatmul.mubr.bf16.gmra.mxu1 %v916_v45  ;;  %v889_v5 = vmax.f32 %v787_v46, 0.0 }
 0x259   :  { %v1775_v48 = vpop.f32.mrf.mxu0 }
 0x25a   :  { %v790_v49 = vadd.f32 %v1774_v47, %v2844_v29 }
 0x25b   :  { %v1776_v4 = vpop.f32.mrf.mxu0 }
 0x25c   :  { %v890_v10 = vmax.f32 %v790_v49, 0.0  ;;  %v1777_v16 = vadd.f32 %v1776_v4, %v1775_v48 }
 0x25d   :  { %v1778_v13 = vpop.f32.mrf.mxu0 }
 0x25e   :  { %v917_v18 = vpack.c.bf16 %v890_v10, %v889_v5  ;;  %v795_v27 = vadd.f32 %v1777_v16, %v2844_v29 }
 0x25f   :  { %v1779_v26 = vpop.f32.mrf.mxu0 }
 0x260   :  { %v1780_v61 = vadd.f32 %v1779_v26, %v1778_v13  ;;  %2041 = vmatprep.mubr.bf16.mxu1 %v917_v18  ;;  %v891_v36 = vmax.f32 %v795_v27, 0.0 }
 0x261   :  { %v1781_v28 = vpop.f32.mrf.mxu0 }
 0x262   :  { %v798_v31 = vadd.f32 %v1780_v61, %v2844_v29 }
 0x263   :  { %v1782_v32 = vpop.f32.mrf.mxu0 }
 0x264   :  { %v892_v12 = vmax.f32 %v798_v31, 0.0  ;;  %v1783_v37 = vadd.f32 %v1782_v32, %v1781_v28 }
 0x265   :  { %v1784_v38 = vpop.f32.mrf.mxu0 }
 0x266   :  { %v918_v39 = vpack.c.bf16 %v892_v12, %v891_v36  ;;  %v803_v41 = vadd.f32 %v1783_v37, %v2844_v29 }
 0x267   :  { %v1785_v40 = vpop.f32.mrf.mxu0 }
 0x268   :  { %v1786_v42 = vadd.f32 %v1785_v40, %v1784_v38  ;;  %2042 = vmatmul.mubr.bf16.gmra.mxu1 %v918_v39  ;;  %v893_v14 = vmax.f32 %v803_v41, 0.0 }
 0x269   :  { %v1787_v63 = vpop.f32.mrf.mxu0 }
 0x26a   :  { %v806_v43 = vadd.f32 %v1786_v42, %v2844_v29 }
 0x26b   :  { %v1788_v44 = vpop.f32.mrf.mxu0 }
 0x26c   :  { %v894_v45 = vmax.f32 %v806_v43, 0.0  ;;  %v1789_v33 = vadd.f32 %v1788_v44, %v1787_v63 }
 0x26d   :  { %v1790_v46 = vpop.f32.mrf.mxu0 }
 0x26e   :  { %v919_v47 = vpack.c.bf16 %v894_v45, %v893_v14  ;;  %v811_v49 = vadd.f32 %v1789_v33, %v2844_v29 }
 0x26f   :  { %v1791_v48 = vpop.f32.mrf.mxu0 }
 0x270   :  { %v1792_v4 = vadd.f32 %v1791_v48, %v1790_v46  ;;  %2045 = vmatprep.mubr.bf16.mxu1 %v919_v47  ;;  %v895_v13 = vmax.f32 %v811_v49, 0.0 }
 0x271   :  { %v1793_v5 = vpop.f32.mrf.mxu0 }
 0x272   :  { %v814_v10 = vadd.f32 %v1792_v4, %v2844_v29 }
 0x273   :  { %v1794_v16 = vpop.f32.mrf.mxu0 }
 0x274   :  { %v896_v18 = vmax.f32 %v814_v10, 0.0  ;;  %v1795_v26 = vadd.f32 %v1794_v16, %v1793_v5 }
 0x275   :  { %v1796_v27 = vpop.f32.mrf.mxu0 }
 0x276   :  { %v920_v61 = vpack.c.bf16 %v896_v18, %v895_v13  ;;  %v819_v31 = vadd.f32 %v1795_v26, %v2844_v29 }
 0x277   :  { %v1797_v28 = vpop.f32.mrf.mxu0 }
 0x278   :  { %v1798_v32 = vadd.f32 %v1797_v28, %v1796_v27  ;;  %2046 = vmatmul.mubr.bf16.gmra.mxu1 %v920_v61  ;;  %v897_v38 = vmax.f32 %v819_v31, 0.0 }
 0x279   :  { %v1799_v36 = vpop.f32.mrf.mxu0 }
 0x27a   :  { %v822_v12 = vadd.f32 %v1798_v32, %v2844_v29 }
 0x27b   :  { %v1800_v37 = vpop.f32.mrf.mxu0 }
 0x27c   :  { %v898_v39 = vmax.f32 %v822_v12, 0.0  ;;  %v1801_v40 = vadd.f32 %v1800_v37, %v1799_v36 }
 0x27d   :  { %v1802_v41 = vpop.f32.mrf.mxu0 }
 0x27e   :  { %v921_v42 = vpack.c.bf16 %v898_v39, %v897_v38  ;;  %v827_v43 = vadd.f32 %v1801_v40, %v2844_v29 }
 0x27f   :  { %v1803_v63 = vpop.f32.mrf.mxu0 }
 0x280   :  { %v1804_v44 = vadd.f32 %v1803_v63, %v1802_v41  ;;  %2049 = vmatprep.mubr.bf16.mxu1 %v921_v42  ;;  %v899_v46 = vmax.f32 %v827_v43, 0.0 }
 0x281   :  { %v1805_v14 = vpop.f32.mrf.mxu0 }
 0x282   :  { %v830_v45 = vadd.f32 %v1804_v44, %v2844_v29 }
 0x283   :  { %v1806_v33 = vpop.f32.mrf.mxu0 }
 0x284   :  { %v900_v47 = vmax.f32 %v830_v45, 0.0  ;;  %v1807_v48 = vadd.f32 %v1806_v33, %v1805_v14 }
 0x285   :  { %v1808_v49 = vpop.f32.mrf.mxu0 }
 0x286   :  { %v922_v4 = vpack.c.bf16 %v900_v47, %v899_v46  ;;  %v835_v10 = vadd.f32 %v1807_v48, %v2844_v29 }
 0x287   :  { %v1809_v5 = vpop.f32.mrf.mxu0 }
 0x288   :  { %v1810_v16 = vadd.f32 %v1809_v5, %v1808_v49  ;;  %2050 = vmatmul.mubr.bf16.gmra.mxu1 %v922_v4  ;;  %v901_v27 = vmax.f32 %v835_v10, 0.0 }
 0x289   :  { %v1811_v13 = vpop.f32.mrf.mxu0 }
 0x28a   :  { %v838_v18 = vadd.f32 %v1810_v16, %v2844_v29 }
 0x28b   :  { %v1812_v26 = vpop.f32.mrf.mxu0 }
 0x28c   :  { %v902_v61 = vmax.f32 %v838_v18, 0.0  ;;  %v1813_v28 = vadd.f32 %v1812_v26, %v1811_v13 }
 0x28d   :  { %v1814_v31 = vpop.f32.mrf.mxu0 }
 0x28e   :  { %v923_v32 = vpack.c.bf16 %v902_v61, %v901_v27  ;;  %v843_v12 = vadd.f32 %v1813_v28, %v2844_v29 }
 0x28f   :  { %v1815_v36 = vpop.f32.mrf.mxu0 }
 0x290   :  { %v1816_v37 = vadd.f32 %v1815_v36, %v1814_v31  ;;  %2053 = vmatprep.mubr.bf16.mxu1 %v923_v32  ;;  %v903_v41 = vmax.f32 %v843_v12, 0.0 }
 0x291   :  { %v1817_v38 = vpop.f32.mrf.mxu0 }
 0x292   :  { %v846_v39 = vadd.f32 %v1816_v37, %v2844_v29 }
 0x293   :  { %v1818_v40 = vpop.f32.mrf.mxu0 }
 0x294   :  { %v904_v42 = vmax.f32 %v846_v39, 0.0  ;;  %v1819_v63 = vadd.f32 %v1818_v40, %v1817_v38 }
 0x295   :  { %v1820_v43 = vpop.f32.mrf.mxu0 }
 0x296   :  { %v924_v44 = vpack.c.bf16 %v904_v42, %v903_v41  ;;  %v851_v45 = vadd.f32 %v1819_v63, %v2844_v29 }
 0x297   :  { %v1821_v14 = vpop.f32.mrf.mxu0 }
 0x298   :  { %v1822_v33 = vadd.f32 %v1821_v14, %v1820_v43  ;;  %2054 = vmatmul.mubr.bf16.gmra.mxu1 %v924_v44  ;;  %v905_v49 = vmax.f32 %v851_v45, 0.0 }
 0x299   :  { %v1823_v46 = vpop.f32.mrf.mxu0 }
 0x29a   :  { %v854_v47 = vadd.f32 %v1822_v33, %v2844_v29 }
 0x29b   :  { %v1824_v48 = vpop.f32.mrf.mxu0 }
 0x29c   :  { %v906_v4 = vmax.f32 %v854_v47, 0.0  ;;  %v1825_v5 = vadd.f32 %v1824_v48, %v1823_v46 }
 0x29d   :  { %v1826_v10 = vpop.f32.mrf.mxu0 }
 0x29e   :  { %v925_v16 = vpack.c.bf16 %v906_v4, %v905_v49  ;;  %v859_v18 = vadd.f32 %v1825_v5, %v2844_v29 }
 0x29f   :  { %v1827_v13 = vpop.f32.mrf.mxu0 }
 0x2a0   :  { %v1828_v26 = vadd.f32 %v1827_v13, %v1826_v10  ;;  %2057 = vmatprep.mubr.bf16.mxu1 %v925_v16  ;;  %v907_v31 = vmax.f32 %v859_v18, 0.0 }
 0x2a1   :  { %v1829_v27 = vpop.f32.mrf.mxu0 }
 0x2a2   :  { %v862_v61 = vadd.f32 %v1828_v26, %v2844_v29 }
 0x2a3   :  { %v1830_v28 = vpop.f32.mrf.mxu0 }
 0x2a4   :  { %v908_v32 = vmax.f32 %v862_v61, 0.0  ;;  %v1831_v36 = vadd.f32 %v1830_v28, %v1829_v27 }
 0x2a5   :  { %v1832_v12 = vpop.f32.mrf.mxu0 }
 0x2a6   :  { %v926_v37 = vpack.c.bf16 %v908_v32, %v907_v31  ;;  %v867_v39 = vadd.f32 %v1831_v36, %v2844_v29 }
 0x2a7   :  { %v1833_v38 = vpop.f32.mrf.mxu0 }
 0x2a8   :  { %v1834_v40 = vadd.f32 %v1833_v38, %v1832_v12  ;;  %2058 = vmatmul.mubr.bf16.gmra.mxu1 %v926_v37  ;;  %v909_v43 = vmax.f32 %v867_v39, 0.0 }
 0x2a9   :  { %v1835_v41 = vpop.f32.mrf.mxu0 }
 0x2aa   :  { %v870_v42 = vadd.f32 %v1834_v40, %v2844_v29 }
 0x2ab   :  { %v1836_v63 = vpop.f32.mrf.mxu0 }
 0x2ac   :  { %v910_v44 = vmax.f32 %v870_v42, 0.0  ;;  %v1837_v14 = vadd.f32 %v1836_v63, %v1835_v41 }
 0x2ad   :  { %v1838_v45 = vpop.f32.mrf.mxu0 }
 0x2ae   :  { %v927_v33 = vpack.c.bf16 %v910_v44, %v909_v43  ;;  %v875_v47 = vadd.f32 %v1837_v14, %v2844_v29 }
 0x2af   :  { %v1839_v46 = vpop.f32.mrf.mxu0 }
 0x2b0   :  { %v1840_v48 = vadd.f32 %v1839_v46, %v1838_v45  ;;  %2061 = vmatprep.mubr.bf16.mxu1 %v927_v33  ;;  %v911_v4 = vmax.f32 %v875_v47, 0.0 }
 0x2b2   :  { %v878_v49 = vadd.f32 %v1840_v48, %v2844_v29 }
 0x2b4   :  { %v912_v5 = vmax.f32 %v878_v49, 0.0 }
 0x2b6   :  { %v928_v10 = vpack.c.bf16 %v912_v5, %v911_v4 }
 0x2b8   :  { %2062 = vmatmul.mubr.bf16.gmra.mxu1 %v928_v10 }
 0x2b9   :  { %1206 = vmatprep.mubr.bf16.mxu1 %v2581_v15 }
 0x308   :  { %v2035_v16 = vpop.f32.mrf.mxu1 }
 0x30a   :  { %v1027_v13 = vpop.f32.mrf.mxu1 }
 0x30c   :  { %v2036_v18 = vpop.f32.mrf.mxu1 }
 0x30d   :  { %v1155_v26 = vpack.c.bf16 %v2036_v18, %v2035_v16 }
 0x30e   :  { %v1030_v27 = vpop.f32.mrf.mxu1 }
 0x30f   :  { %v1154_v61 = vpack.c.bf16 %v1030_v27, %v1027_v13 }
 0x318   :  { %v2039_v28 = vpop.f32.mrf.mxu1 }
 0x31a   :  { %v1043_v31 = vpop.f32.mrf.mxu1 }
 0x31c   :  { %v2040_v32 = vpop.f32.mrf.mxu1 }
 0x31d   :  { %v1157_v36 = vpack.c.bf16 %v2040_v32, %v2039_v28 }
 0x31e   :  { %v1046_v12 = vpop.f32.mrf.mxu1 }
 0x31f   :  { %v1156_v37 = vpack.c.bf16 %v1046_v12, %v1043_v31 }
 0x328   :  { %v2043_v38 = vpop.f32.mrf.mxu1 }
 0x32a   :  { %v1059_v29 = vpop.f32.mrf.mxu1 }
 0x32c   :  { %v2044_v39 = vpop.f32.mrf.mxu1 }
 0x32d   :  { %v1159_v25 = vpack.c.bf16 %v2044_v39, %v2043_v38 }
 0x32e   :  { %v1062_v40 = vpop.f32.mrf.mxu1 }
 0x32f   :  { %v1158_v24 = vpack.c.bf16 %v1062_v40, %v1059_v29 }
 0x338   :  { %v2047_v41 = vpop.f32.mrf.mxu1 }
 0x33a   :  { %v1075_v42 = vpop.f32.mrf.mxu1 }
 0x33c   :  { %v2048_v63 = vpop.f32.mrf.mxu1 }
 0x33d   :  { %v1161_v28 = vpack.c.bf16 %v2048_v63, %v2047_v41 }
 0x33e   :  { %v1078_v15 = vpop.f32.mrf.mxu1 }
 0x33f   :  { %v1160_v12 = vpack.c.bf16 %v1078_v15, %v1075_v42 }
 0x348   :  { %v2051_v43 = vpop.f32.mrf.mxu1 }
 0x34a   :  { %v1091_v44 = vpop.f32.mrf.mxu1 }
 0x34c   :  { %v2052_v14 = vpop.f32.mrf.mxu1 }
 0x34d   :  { %v1163_v41 = vpack.c.bf16 %v2052_v14, %v2051_v43 }
 0x34e   :  { %v1094_v45 = vpop.f32.mrf.mxu1 }
 0x34f   :  { %v1162_v63 = vpack.c.bf16 %v1094_v45, %v1091_v44 }
 0x358   :  { %v2055_v33 = vpop.f32.mrf.mxu1 }
 0x35a   :  { %v1107_v46 = vpop.f32.mrf.mxu1 }
 0x35c   :  { %v2056_v47 = vpop.f32.mrf.mxu1 }
 0x35d   :  { %v1165_v23 = vpack.c.bf16 %v2056_v47, %v2055_v33 }
 0x35e   :  { %v1110_v48 = vpop.f32.mrf.mxu1 }
 0x35f   :  { %v1164_v22 = vpack.c.bf16 %v1110_v48, %v1107_v46 }
 0x368   :  { %v2059_v49 = vpop.f32.mrf.mxu1 }
 0x36a   :  { %v1123_v4 = vpop.f32.mrf.mxu1 }
 0x36c   :  { %v2060_v5 = vpop.f32.mrf.mxu1 }
 0x36d   :  { %v1167_v30 = vpack.c.bf16 %v2060_v5, %v2059_v49 }
 0x36e   :  { %v1126_v10 = vpop.f32.mrf.mxu1 }
 0x36f   :  { %v1166_v11 = vpack.c.bf16 %v1126_v10, %v1123_v4 }
 0x378   :  { %v2063_v16 = vpop.f32.mrf.mxu1 }
 0x37a   :  { %v1139_v13 = vpop.f32.mrf.mxu1 }
 0x37c   :  { %v2064_v18 = vpop.f32.mrf.mxu1 }
 0x37d   :  { %v1169_v27 = vpack.c.bf16 %v2064_v18, %v2063_v16  ;;  %v2209_v18 = vld [vmem:[#allocation5 + $0x4] ss:$8 sps:$4 sm:$0xff]  }
 0x37e   :  { %v1142_v31 = vpop.f32.mrf.mxu1  ;;  %1427 = vmatprep.mubr.bf16.mxu0 %v2209_v18 }
 0x37f   :  { %v1168_v32 = vpack.c.bf16 %v1142_v31, %v1139_v13  ;;  %1865 = vmatprep.subr.bf16.mxu1 %v1169_v27 }
 0x380   :  { %1866 = vmatpush3.bf16.msra.mxu1 %v1161_v28 }
 0x381   :  { %1867 = vmatprep.subr.bf16.mxu1 %v1168_v32 }
 0x384   :  { %1868 = vmatpush3.bf16.msra.mxu1 %v1160_v12 }
 0x385   :  { %1869 = vmatprep.subr.bf16.mxu1 %v1167_v30  ;;  %v3007_v30 = vld [vmem:[#allocation16_spill] sm:$0xff] }
 0x388   :  { %1870 = vmatpush3.bf16.msra.mxu1 %v1159_v25 }
 0x389   :  { %1871 = vmatprep.subr.bf16.mxu1 %v1166_v11 }
 0x38c   :  { %1872 = vmatpush3.bf16.msra.mxu1 %v1158_v24 }
 0x38d   :  { %1873 = vmatprep.subr.bf16.mxu1 %v1165_v23 }
 0x390   :  { %1874 = vmatpush3.bf16.msra.mxu1 %v1157_v36 }
 0x391   :  { %1875 = vmatprep.subr.bf16.mxu1 %v1164_v22 }
 0x394   :  { %1876 = vmatpush3.bf16.msra.mxu1 %v1156_v37 }
 0x395   :  { %1877 = vmatprep.subr.bf16.mxu1 %v1163_v41 }
 0x398   :  { %1878 = vmatpush3.bf16.msra.mxu1 %v1155_v26 }
 0x399   :  { %1879 = vmatprep.subr.bf16.mxu1 %v1162_v63 }
 0x39c   :  { %1880 = vmatpush3.bf16.msra.mxu1 %v1154_v61 }
 0x39f   :  { %1207 = vmatmul.mubr.bf16.vlgmr.msra.gmra.mxu1 %v2659_v50  ;;  %v3008_v50 = vld [vmem:[#allocation17_spill] sm:$0xff] }
 0x3a0   :  { %1214 = vmatprep.mubr.bf16.mxu1 %v2664_v35  ;;  %v3009_v35 = vld [vmem:[#allocation18_spill] sm:$0xff] }
 0x3a7   :  { %1215 = vmatmul.mubr.bf16.gmra.mxu1 %v2671_v34  ;;  %v3010_v34 = vld [vmem:[#allocation19_spill] sm:$0xff] }
 0x3a8   :  { %1222 = vmatprep.mubr.bf16.mxu1 %v2676_v17  ;;  %v3011_v17 = vld [vmem:[#allocation20_spill] sm:$0xff] }
 0x3af   :  { %1223 = vmatmul.mubr.bf16.gmra.mxu1 %v2683_v51  ;;  %v3012_v51 = vld [vmem:[#allocation15_spill] sm:$0xff] }
 0x3b0   :  { %1230 = vmatprep.mubr.bf16.mxu1 %v2688_v52  ;;  %v1172_v52 = vsub.s32 1, %v3012_v51 }
 0x3b7   :  { %1231 = vmatmul.mubr.bf16.gmra.mxu1 %v2695_v53 }
 0x3b8   :  { %1238 = vmatprep.mubr.bf16.mxu1 %v2700_v54 }
 0x3bf   :  { %1239 = vmatmul.mubr.bf16.gmra.mxu1 %v2707_v55  ;;  %v2914_v55 = vld [vmem:[%s2992_s6] sm:$0xff]  ;;  %s2347_s6 = smov [#allocation10]  }
 0x3c0   :  { %1246 = vmatprep.mubr.bf16.mxu1 %v2712_v56  ;;  %v2917_v56 = vrot.slane %v2914_v55, %v1172_v52  ;;  %s1660_s3 = sshll.u32 %s2347_s6, 4  ;;  %s1661_s3 = int_to_ptr.vmem [resolvable:$true] %s1660_s3 }
 0x3c1   :  { %s2307_s18 = scalar_lea.vmem %s1661_s3, 128  ;;  %p2312_p7 = scmp.lt.s32.totalorder %s1661_s3, %s1661_s3 }
 0x3c2   :  { %p2308_p6 = scmp.ne.s32.totalorder %s1661_s3, %s2307_s18  ;;  %p2313_p8 = scmp.lt.s32.totalorder %s2307_s18, %s2307_s18 }
 0x3c4   :  { %p2314_p9 = por %p2313_p8, %p2312_p7 }
 0x3c6   :  { %p2315_p10 = pnand %p2314_p9, %p2308_p6 }
 0x3c7   :  { %1247 = vmatmul.mubr.bf16.gmra.mxu1 %v2719_v58 }
 0x3c8   :  { %1254 = vmatprep.mubr.bf16.mxu1 %v2724_v59 }
 0x3cf   :  { %1255 = vmatmul.mubr.bf16.gmra.mxu1 %v2731_v60 }
 0x3d0   :  { %1262 = vmatprep.mubr.bf16.mxu1 %v2736_v57 }
 0x3d7   :  { %1263 = vmatmul.mubr.bf16.gmra.mxu1 %v2743_v6 }
 0x3d8   :  { %1270 = vmatprep.mubr.bf16.mxu1 %v2748_v62 }
 0x3df   :  { %1271 = vmatmul.mubr.bf16.gmra.mxu1 %v2755_v2 }
 0x3e0   :  { %1278 = vmatprep.mubr.bf16.mxu1 %v2760_v3 }
 0x3e7   :  { %1279 = vmatmul.mubr.bf16.gmra.mxu1 %v2767_v7 }
 0x3e8   :  { %1286 = vmatprep.mubr.bf16.mxu1 %v2772_v9 }
 0x3ef   :  { %1287 = vmatmul.mubr.bf16.gmra.mxu1 %v2779_v1 }
 0x3f0   :  { %1294 = vmatprep.mubr.bf16.mxu1 %v2784_v8 }
 0x3f7   :  { %1295 = vmatmul.mubr.bf16.gmra.mxu1 %v2791_v0 }
 0x3f8   :  { %1302 = vmatprep.mubr.bf16.mxu1 %v2796_v19 }
 0x3ff   :  { %1303 = vmatmul.mubr.bf16.gmra.mxu1 %v2803_v20 }
 0x400   :  { %1310 = vmatprep.mubr.bf16.mxu1 %v2808_v21 }
 0x407   :  { %1311 = vmatmul.mubr.bf16.gmra.mxu1 %v3007_v30 }
 0x408   :  { %1318 = vmatprep.mubr.bf16.mxu1 %v3008_v50 }
 0x40f   :  { %1319 = vmatmul.mubr.bf16.gmra.mxu1 %v3009_v35 }
 0x410   :  { %1326 = vmatprep.mubr.bf16.mxu1 %v3010_v34 }
 0x417   :  { %1327 = vmatmul.mubr.bf16.gmra.mxu1 %v3011_v17 }
 0x45f   :  { %v1881_v53 = vpop.f32.mrf.mxu1 }
 0x461   :  { %v1882_v54 = vpop.f32.mrf.mxu1 }
 0x462   :  { %v1883_v58 = vadd.f32 %v1882_v54, %v1881_v53 }
 0x463   :  { %v1884_v59 = vpop.f32.mrf.mxu1 }
 0x464   :  { %v1209_v57 = vadd.f32 %v1883_v58, %v2917_v56 }
 0x465   :  { %v1885_v60 = vpop.f32.mrf.mxu1 }
 0x466   :  { %v1886_v6 = vadd.f32 %v1885_v60, %v1884_v59  ;;  %v1335_v7 = vmax.f32 %v1209_v57, 0.0 }
 0x467   :  { %v1887_v62 = vpop.f32.mrf.mxu1 }
 0x468   :  { %v1212_v2 = vadd.f32 %v1886_v6, %v2917_v56 }
 0x469   :  { %v1888_v3 = vpop.f32.mrf.mxu1 }
 0x46a   :  { %v1336_v9 = vmax.f32 %v1212_v2, 0.0  ;;  %v1889_v1 = vadd.f32 %v1888_v3, %v1887_v62 }
 0x46b   :  { %v1890_v8 = vpop.f32.mrf.mxu1 }
 0x46c   :  { %v2921_v0 = vpack.c.bf16 %v1336_v9, %v1335_v7  ;;  %v1217_v20 = vadd.f32 %v1889_v1, %v2917_v56 }
 0x46d   :  { %v1891_v19 = vpop.f32.mrf.mxu1 }
 0x46e   :  { %v1892_v21 = vadd.f32 %v1891_v19, %v1890_v8  ;;  %v1337_v11 = vmax.f32 %v1217_v20, 0.0 }
 0x46f   :  { %v1893_v22 = vpop.f32.mrf.mxu1 }
 0x470   :  { %v1220_v23 = vadd.f32 %v1892_v21, %v2917_v56 }
 0x471   :  { %v1894_v24 = vpop.f32.mrf.mxu1 }
 0x472   :  { %v1338_v25 = vmax.f32 %v1220_v23, 0.0  ;;  %v1895_v26 = vadd.f32 %v1894_v24, %v1893_v22 }
 0x473   :  { %v1896_v61 = vpop.f32.mrf.mxu1 }
 0x474   :  { %v2925_v36 = vpack.c.bf16 %v1338_v25, %v1337_v11  ;;  %v1225_v38 = vadd.f32 %v1895_v26, %v2917_v56 }
 0x475   :  { %v1897_v37 = vpop.f32.mrf.mxu1 }
 0x476   :  { %v1898_v29 = vadd.f32 %v1897_v37, %v1896_v61  ;;  %v1339_v15 = vmax.f32 %v1225_v38, 0.0 }
 0x477   :  { %v1899_v39 = vpop.f32.mrf.mxu1 }
 0x478   :  { %v1228_v40 = vadd.f32 %v1898_v29, %v2917_v56 }
 0x479   :  { %v1900_v42 = vpop.f32.mrf.mxu1 }
 0x47a   :  { %v1340_v43 = vmax.f32 %v1228_v40, 0.0  ;;  %v1901_v44 = vadd.f32 %v1900_v42, %v1899_v39 }
 0x47b   :  { %v1902_v14 = vpop.f32.mrf.mxu1 }
 0x47c   :  { %v2929_v45 = vpack.c.bf16 %v1340_v43, %v1339_v15  ;;  %v1233_v46 = vadd.f32 %v1901_v44, %v2917_v56 }
 0x47d   :  { %v1903_v33 = vpop.f32.mrf.mxu1 }
 0x47e   :  { %v1904_v47 = vadd.f32 %v1903_v33, %v1902_v14  ;;  %v1341_v5 = vmax.f32 %v1233_v46, 0.0 }
 0x47f   :  { %v1905_v48 = vpop.f32.mrf.mxu1 }
 0x480   :  { %v1236_v49 = vadd.f32 %v1904_v47, %v2917_v56 }
 0x481   :  { %v1906_v4 = vpop.f32.mrf.mxu1 }
 0x482   :  { %v1342_v10 = vmax.f32 %v1236_v49, 0.0  ;;  %v1907_v16 = vadd.f32 %v1906_v4, %v1905_v48 }
 0x483   :  { %v1908_v13 = vpop.f32.mrf.mxu1 }
 0x484   :  { %v2933_v27 = vpack.c.bf16 %v1342_v10, %v1341_v5  ;;  %v1241_v31 = vadd.f32 %v1907_v16, %v2917_v56 }
 0x485   :  { %v1909_v28 = vpop.f32.mrf.mxu1 }
 0x486   :  { %v1910_v32 = vadd.f32 %v1909_v28, %v1908_v13  ;;  %v1343_v30 = vmax.f32 %v1241_v31, 0.0 }
 0x487   :  { %v1911_v12 = vpop.f32.mrf.mxu1 }
 0x488   :  { %v1244_v41 = vadd.f32 %v1910_v32, %v2917_v56 }
 0x489   :  { %v1912_v63 = vpop.f32.mrf.mxu1 }
 0x48a   :  { %v1344_v50 = vmax.f32 %v1244_v41, 0.0  ;;  %v1913_v35 = vadd.f32 %v1912_v63, %v1911_v12 }
 0x48b   :  { %v1914_v34 = vpop.f32.mrf.mxu1 }
 0x48c   :  { %v2937_v17 = vpack.c.bf16 %v1344_v50, %v1343_v30  ;;  %v1249_v53 = vadd.f32 %v1913_v35, %v2917_v56 }
 0x48d   :  { %v1915_v52 = vpop.f32.mrf.mxu1 }
 0x48e   :  { %v1916_v54 = vadd.f32 %v1915_v52, %v1914_v34  ;;  %v1345_v57 = vmax.f32 %v1249_v53, 0.0 }
 0x48f   :  { %v1917_v58 = vpop.f32.mrf.mxu1 }
 0x490   :  { %v1252_v59 = vadd.f32 %v1916_v54, %v2917_v56 }
 0x491   :  { %v1918_v60 = vpop.f32.mrf.mxu1 }
 0x492   :  { %v1346_v6 = vmax.f32 %v1252_v59, 0.0  ;;  %v1919_v62 = vadd.f32 %v1918_v60, %v1917_v58 }
 0x493   :  { %v1920_v2 = vpop.f32.mrf.mxu1 }
 0x494   :  { %v2941_v3 = vpack.c.bf16 %v1346_v6, %v1345_v57  ;;  %v1257_v9 = vadd.f32 %v1919_v62, %v2917_v56 }
 0x495   :  { %v1921_v7 = vpop.f32.mrf.mxu1 }
 0x496   :  { %v1922_v1 = vadd.f32 %v1921_v7, %v1920_v2  ;;  %v1347_v21 = vmax.f32 %v1257_v9, 0.0 }
 0x497   :  { %v1923_v8 = vpop.f32.mrf.mxu1 }
 0x498   :  { %v1260_v19 = vadd.f32 %v1922_v1, %v2917_v56 }
 0x499   :  { %v1924_v20 = vpop.f32.mrf.mxu1 }
 0x49a   :  { %v1348_v22 = vmax.f32 %v1260_v19, 0.0  ;;  %v1925_v23 = vadd.f32 %v1924_v20, %v1923_v8 }
 0x49b   :  { %v1926_v24 = vpop.f32.mrf.mxu1 }
 0x49c   :  { %v2945_v11 = vpack.c.bf16 %v1348_v22, %v1347_v21  ;;  %v1265_v26 = vadd.f32 %v1925_v23, %v2917_v56 }
 0x49d   :  { %v1927_v25 = vpop.f32.mrf.mxu1 }
 0x49e   :  { %v1928_v61 = vadd.f32 %v1927_v25, %v1926_v24  ;;  %v1349_v39 = vmax.f32 %v1265_v26, 0.0 }
 0x49f   :  { %v1929_v37 = vpop.f32.mrf.mxu1 }
 0x4a0   :  { %v1268_v38 = vadd.f32 %v1928_v61, %v2917_v56 }
 0x4a1   :  { %v1930_v29 = vpop.f32.mrf.mxu1 }
 0x4a2   :  { %v1350_v40 = vmax.f32 %v1268_v38, 0.0  ;;  %v1931_v42 = vadd.f32 %v1930_v29, %v1929_v37 }
 0x4a3   :  { %v1932_v15 = vpop.f32.mrf.mxu1 }
 0x4a4   :  { %v2949_v43 = vpack.c.bf16 %v1350_v40, %v1349_v39  ;;  %v1273_v14 = vadd.f32 %v1931_v42, %v2917_v56 }
 0x4a5   :  { %v1933_v44 = vpop.f32.mrf.mxu1 }
 0x4a6   :  { %v1934_v33 = vadd.f32 %v1933_v44, %v1932_v15  ;;  %v1351_v49 = vmax.f32 %v1273_v14, 0.0 }
 0x4a7   :  { %v1935_v46 = vpop.f32.mrf.mxu1 }
 0x4a8   :  { %v1276_v47 = vadd.f32 %v1934_v33, %v2917_v56 }
 0x4a9   :  { %v1936_v48 = vpop.f32.mrf.mxu1 }
 0x4aa   :  { %v1352_v4 = vmax.f32 %v1276_v47, 0.0  ;;  %v1937_v5 = vadd.f32 %v1936_v48, %v1935_v46 }
 0x4ab   :  { %v1938_v10 = vpop.f32.mrf.mxu1 }
 0x4ac   :  { %v2953_v16 = vpack.c.bf16 %v1352_v4, %v1351_v49  ;;  %v1281_v18 = vadd.f32 %v1937_v5, %v2917_v56 }
 0x4ad   :  { %v1939_v13 = vpop.f32.mrf.mxu1 }
 0x4ae   :  { %v1940_v28 = vadd.f32 %v1939_v13, %v1938_v10  ;;  %v1353_v41 = vmax.f32 %v1281_v18, 0.0 }
 0x4af   :  { %v1941_v31 = vpop.f32.mrf.mxu1 }
 0x4b0   :  { %v1284_v32 = vadd.f32 %v1940_v28, %v2917_v56 }
 0x4b1   :  { %v1942_v12 = vpop.f32.mrf.mxu1 }
 0x4b2   :  { %v1354_v63 = vmax.f32 %v1284_v32, 0.0 }
 0x4b3   :  { %v1944_v30 = vpop.f32.mrf.mxu1 }
 0x4b4   :  { %v2957_v50 = vpack.c.bf16 %v1354_v63, %v1353_v41 }
 0x4b5   :  { %v1945_v35 = vpop.f32.mrf.mxu1 }
 0x4b6   :  { %v1946_v63 = vadd.f32 %v1945_v35, %v1944_v30 }
 0x4b7   :  { %v1947_v34 = vpop.f32.mrf.mxu1 }
 0x4b9   :  { %v1948_v52 = vpop.f32.mrf.mxu1 }
 0x4ba   :  { %v1949_v28 = vadd.f32 %v1948_v52, %v1947_v34 }
 0x4bb   :  { %v1950_v53 = vpop.f32.mrf.mxu1 }
 0x4bd   :  { %v1951_v54 = vpop.f32.mrf.mxu1 }
 0x4be   :  { %v1952_v5 = vadd.f32 %v1951_v54, %v1950_v53  ;;  %v1943_v53 = vadd.f32 %v1942_v12, %v1941_v31  ;;  %v1297_v54 = vadd.f32 %v1949_v28, %v2917_v56  ;;  %v2345_v12 = vmov 0.0  }
 0x4bf   :  { %v1953_v58 = vpop.f32.mrf.mxu1 }
 0x4c0   :  { %v1289_v52 = vadd.f32 %v1943_v53, %v2917_v56  ;;  %v1357_v30 = vmax.f32 %v1297_v54, 0.0 }
 0x4c1   :  { %v1954_v59 = vpop.f32.mrf.mxu1 }
 0x4c2   :  { %v1955_v47 = vadd.f32 %v1954_v59, %v1953_v58  ;;  %v1300_v58 = vadd.f32 %v1952_v5, %v2917_v56 }
 0x4c3   :  { %v1956_v60 = vpop.f32.mrf.mxu1 }
 0x4c4   :  { %v1305_v32 = vadd.f32 %v1955_v47, %v2917_v56 }
 0x4c5   :  { %v1957_v57 = vpop.f32.mrf.mxu1 }
 0x4c6   :  { %v1958_v15 = vadd.f32 %v1957_v57, %v1956_v60  ;;  %v1359_v57 = vmax.f32 %v1305_v32, 0.0 }
 0x4c7   :  { %v1959_v6 = vpop.f32.mrf.mxu1 }
 0x4c8   :  { %v1308_v10 = vadd.f32 %v1958_v15, %v2917_v56  ;;  %v1650_v15 = vsub.s32 2, %v3012_v51 }
 0x4c9   :  { %v1960_v62 = vpop.f32.mrf.mxu1 }
 0x4ca   :  { %v1961_v39 = vadd.f32 %v1960_v62, %v1959_v6  ;;  %v1360_v59 = vmax.f32 %v1308_v10, 0.0  ;;  %v1292_v6 = vadd.f32 %v1946_v63, %v2917_v56 }
 0x4cb   :  { %v1962_v2 = vpop.f32.mrf.mxu1 }
 0x4cc   :  { %v1313_v48 = vadd.f32 %v1961_v39, %v2917_v56  ;;  %v1379_v34 = vpack.c.bf16 %v1360_v59, %v1359_v57  ;;  %v1356_v35 = vmax.f32 %v1292_v6, 0.0 }
 0x4cd   :  { %v1963_v7 = vpop.f32.mrf.mxu1 }
 0x4ce   :  { %v1964_v61 = vadd.f32 %v1963_v7, %v1962_v2  ;;  %v1361_v41 = vmax.f32 %v1313_v48, 0.0 }
 0x4cf   :  { %v1965_v9 = vpop.f32.mrf.mxu1 }
 0x4d0   :  { %v1316_v44 = vadd.f32 %v1964_v61, %v2917_v56  ;;  %v2223_v61 = vld [vmem:[#allocation7 + $0x10] sm:$0xff]  }
 0x4d1   :  { %v1966_v1 = vpop.f32.mrf.mxu1 }
 0x4d2   :  { %v1967_v25 = vadd.f32 %v1966_v1, %v1965_v9  ;;  %v1362_v13 = vmax.f32 %v1316_v44, 0.0  ;;  %v1651_v44 = vrot.slane %v2914_v55, %v1650_v15 }
 0x4d3   :  { %v1968_v8 = vpop.f32.mrf.mxu1 }
 0x4d4   :  { %v1321_v40 = vadd.f32 %v1967_v25, %v2917_v56  ;;  %v1380_v60 = vpack.c.bf16 %v1362_v13, %v1361_v41  ;;  %v2221_v25 = vld [vmem:[#allocation7 + $0x20] sm:$0xff]  }
 0x4d5   :  { %v1969_v19 = vpop.f32.mrf.mxu1 }
 0x4d6   :  { %v1970_v22 = vadd.f32 %v1969_v19, %v1968_v8  ;;  %v1363_v49 = vmax.f32 %v1321_v40, 0.0 }
 0x4d7   :  { %v1971_v20 = vpop.f32.mrf.mxu1 }
 0x4d8   :  { %v1324_v37 = vadd.f32 %v1970_v22, %v2917_v56 }
 0x4d9   :  { %v1972_v21 = vpop.f32.mrf.mxu1 }
 0x4da   :  { %v1973_v23 = vadd.f32 %v1972_v21, %v1971_v20  ;;  %v1364_v14 = vmax.f32 %v1324_v37, 0.0  ;;  %v2218_v21 = vld [vmem:[#allocation7 + $0x38] sm:$0xff]   ;;  %v2224_v37 = vld [vmem:[#allocation7 + $0x8] sm:$0xff]  }
 0x4db   :  { %v1974_v24 = vpop.f32.mrf.mxu1 }
 0x4dc   :  { %v1329_v38 = vadd.f32 %v1973_v23, %v2917_v56  ;;  %v1381_v18 = vpack.c.bf16 %v1364_v14, %v1363_v49  ;;  %v2219_v23 = vld [vmem:[#allocation7 + $0x30] sm:$0xff]  }
 0x4dd   :  { %v1975_v26 = vpop.f32.mrf.mxu1 }
 0x4de   :  { %v1976_v29 = vadd.f32 %v1975_v26, %v1974_v24  ;;  %v1365_v33 = vmax.f32 %v1329_v38, 0.0  ;;  %v2220_v24 = vld [vmem:[#allocation7 + $0x28] sm:$0xff]   ;;  %v2222_v26 = vld [vmem:[#allocation7 + $0x18] sm:$0xff]   ;;  %v2225_v38 = vld [vmem:[#allocation7] sm:$0xff]  }
 0x4e0   :  { %v1332_v42 = vadd.f32 %v1976_v29, %v2917_v56  ;;  %v2207_v56 = vld [vmem:[#allocation5] ss:$8 sps:$4 sm:$0xff]  }
 0x4e2   :  { %v1366_v46 = vmax.f32 %v1332_v42, 0.0 }
 0x4e4   :  { %v1382_v4 = vpack.c.bf16 %v1366_v46, %v1365_v33 }
 0x4e6   :  { %1977 = vmatprep.subr.bf16.mxu0 %v1382_v4 }
 0x4e7   :  { %1978 = vmatpush3.bf16.msra.mxu0 %v2949_v43  ;;  %v1358_v43 = vmax.f32 %v1300_v58, 0.0 }
 0x4e8   :  { %1979 = vmatprep.subr.bf16.mxu0 %v1381_v18 }
 0x4e9   :  { %v1378_v62 = vpack.c.bf16 %v1358_v43, %v1357_v30 }
 0x4eb   :  { %1980 = vmatpush3.bf16.msra.mxu0 %v2945_v11  ;;  %v1355_v11 = vmax.f32 %v1289_v52, 0.0 }
 0x4ec   :  { %1981 = vmatprep.subr.bf16.mxu0 %v1380_v60 }
 0x4ed   :  { %v1377_v31 = vpack.c.bf16 %v1356_v35, %v1355_v11 }
 0x4ef   :  { %1982 = vmatpush3.bf16.msra.mxu0 %v2941_v3  ;;  %v2210_v3 = vld [vmem:[#allocation8 + $0x38] sm:$0xff]  }
 0x4f0   :  { %1983 = vmatprep.subr.bf16.mxu0 %v1379_v34 }
 0x4f3   :  { %1984 = vmatpush3.bf16.msra.mxu0 %v2937_v17  ;;  %v2211_v17 = vld [vmem:[#allocation8 + $0x30] sm:$0xff]  }
 0x4f4   :  { %1985 = vmatprep.subr.bf16.mxu0 %v1378_v62 }
 0x4f7   :  { %1986 = vmatpush3.bf16.msra.mxu0 %v2933_v27  ;;  %v2212_v27 = vld [vmem:[#allocation8 + $0x28] sm:$0xff]  }
 0x4f8   :  { %1987 = vmatprep.subr.bf16.mxu0 %v1377_v31 }
 0x4fb   :  { %1988 = vmatpush3.bf16.msra.mxu0 %v2929_v45  ;;  %v2213_v45 = vld [vmem:[#allocation8 + $0x20] sm:$0xff]  }
 0x4fc   :  { %1989 = vmatprep.subr.bf16.mxu0 %v2957_v50  ;;  %v2217_v50 = vld [vmem:[#allocation8] sm:$0xff]  }
 0x4ff   :  { %1990 = vmatpush3.bf16.msra.mxu0 %v2925_v36  ;;  %v2214_v36 = vld [vmem:[#allocation8 + $0x18] sm:$0xff]  }
 0x500   :  { %1991 = vmatprep.subr.bf16.mxu0 %v2953_v16  ;;  %v2215_v16 = vld [vmem:[#allocation8 + $0x10] sm:$0xff]  }
 0x503   :  { %1992 = vmatpush3.bf16.msra.mxu0 %v2921_v0  ;;  %v2216_v0 = vld [vmem:[#allocation8 + $0x8] sm:$0xff]  }
 0x504   :  { %2065 = vmatprep.subr.bf16.mxu0 %v2345_v12 }
 0x506   :  { %1428 = vmatmul.mubr.bf16.vlgmr.msra.gmra.mxu0 %v2207_v56 }
 0x507   :  { %2066 = vmatpush3.bf16.msra.mxu0 %v2210_v3  ;;  %2081 = vmatprep.mubr.msk.bf16.mxu0 %vm2346_vm0, %v2345_v12 }
 0x508   :  { %2067 = vmatprep.subr.bf16.mxu0 %v2345_v12 }
 0x50b   :  { %2068 = vmatpush3.bf16.msra.mxu0 %v2211_v17 }
 0x50c   :  { %2069 = vmatprep.subr.bf16.mxu0 %v2345_v12 }
 0x50f   :  { %2070 = vmatpush3.bf16.msra.mxu0 %v2212_v27 }
 0x510   :  { %2071 = vmatprep.subr.bf16.mxu0 %v2345_v12 }
 0x513   :  { %2072 = vmatpush3.bf16.msra.mxu0 %v2213_v45 }
 0x514   :  { %2073 = vmatprep.subr.bf16.mxu0 %v2345_v12 }
 0x517   :  { %2074 = vmatpush3.bf16.msra.mxu0 %v2214_v36 }
 0x518   :  { %2075 = vmatprep.subr.bf16.mxu0 %v2345_v12 }
 0x51b   :  { %2076 = vmatpush3.bf16.msra.mxu0 %v2215_v16 }
 0x51c   :  { %2077 = vmatprep.subr.bf16.mxu0 %v2345_v12 }
 0x51f   :  { %2078 = vmatpush3.bf16.msra.mxu0 %v2216_v0 }
 0x520   :  { %2079 = vmatprep.subr.bf16.mxu0 %v2345_v12 }
 0x523   :  { %2080 = vmatpush3.bf16.msra.mxu0 %v2217_v50 }
 0x524   :  { %2085 = vmatprep.subr.bf16.mxu0 %v2345_v12 }
 0x5c6   :  { %v1993_v2 = vpop.f32.mrf.mxu0 }
 0x5c8   :  { %v1994_v7 = vpop.f32.mrf.mxu0 }
 0x5c9   :  { %v1995_v8 = vadd.f32 %v1994_v7, %v1993_v2 }
 0x5ca   :  { %v1996_v9 = vpop.f32.mrf.mxu0 }
 0x5cc   :  { %v1997_v1 = vpop.f32.mrf.mxu0 }
 0x5cd   :  { %v1998_v19 = vadd.f32 %v1997_v1, %v1996_v9 }
 0x5cf   :  { %v1436_v20 = vpack.c.bf16 %v1998_v19, %v1995_v8 }
 0x5d1   :  { %v1470_v22 = vrot.slane %v1436_v20, 4 }
 0x5d3   :  { %2082 = vmatmul.mubr.bf16.vlgmr.msra.gmra.mxu0 %v1470_v22 }
 0x5d4   :  { %2086 = vmatpush3.bf16.msra.mxu0 %v2218_v21  ;;  %2101 = vmatprep.mubr.msk.bf16.mxu0 %vm2346_vm0, %v2345_v12 }
 0x5d5   :  { %2087 = vmatprep.subr.bf16.mxu0 %v2345_v12 }
 0x5d8   :  { %2088 = vmatpush3.bf16.msra.mxu0 %v2219_v23 }
 0x5d9   :  { %2089 = vmatprep.subr.bf16.mxu0 %v2345_v12 }
 0x5dc   :  { %2090 = vmatpush3.bf16.msra.mxu0 %v2220_v24 }
 0x5dd   :  { %2091 = vmatprep.subr.bf16.mxu0 %v2345_v12 }
 0x5e0   :  { %2092 = vmatpush3.bf16.msra.mxu0 %v2221_v25 }
 0x5e1   :  { %2093 = vmatprep.subr.bf16.mxu0 %v2345_v12 }
 0x5e4   :  { %2094 = vmatpush3.bf16.msra.mxu0 %v2222_v26 }
 0x5e5   :  { %2095 = vmatprep.subr.bf16.mxu0 %v2345_v12 }
 0x5e8   :  { %2096 = vmatpush3.bf16.msra.mxu0 %v2223_v61 }
 0x5e9   :  { %2097 = vmatprep.subr.bf16.mxu0 %v2345_v12 }
 0x5ec   :  { %2098 = vmatpush3.bf16.msra.mxu0 %v2224_v37 }
 0x5ed   :  { %2099 = vmatprep.subr.bf16.mxu0 %v2345_v12 }
 0x5f0   :  { %2100 = vmatpush3.bf16.msra.mxu0 %v2225_v38 }
 0x5f3   :  { %2102 = vmatmul.mubr.bf16.vlgmr.msra.gmra.mxu0 %v1436_v20 }
 0x693   :  { %v1554_v29 = vpop.f32.mrf.mxu0 }
 0x695   :  { %v2083_v39 = vpop.f32.mrf.mxu0 }
 0x697   :  { %v1557_v40 = vpop.f32.mrf.mxu0 }
 0x699   :  { %v2084_v42 = vpop.f32.mrf.mxu0 }
 0x6b3   :  { %v1642_v14 = vpop.f32.mrf.mxu0 }
 0x6b4   :  { %v1643_v33 = vadd.f32 %v1642_v14, %v1554_v29 }
 0x6b5   :  { %v2103_v46 = vpop.f32.mrf.mxu0 }
 0x6b6   :  { %v1652_v47 = vadd.f32 %v1651_v44, %v1643_v33 }
 0x6b7   :  { %v1645_v48 = vpop.f32.mrf.mxu0 }
 0x6b8   :  { %1653 = vst [vmem:[#allocation10] sm:$0xff] %v1652_v47 }
 0x6b9   :  { %v2104_v49 = vpop.f32.mrf.mxu0 }
 0x6ba   :  { %2318 = shalt.err (!%p2315_p10)
}
 0x6bb   :  { %1663 = dma.vmem_to_hbm [thread:$0]  %s1661_s3, 128, %s2993_s7, [#allocation4]  }
 0x6bc   :  { %2333 = dma.done.wait [#allocation4], 128  }
 0x6bd   :  { %2334 = vsyncadd [#allocation4], 4294967168 }
 0x6be   :  { %1667 = vsyncpa [#allocation3], 1 }
 0x6bf   :  { %1668 = vsyncpa [#allocation6], 1 }
 0x6c0   :  { %1669 = vsyncpa [#allocation9], 1 }
 0x6c1   :  { %1670 = vsyncpa [#allocation4], 1 }

</bundles_post_ra>
